<compile_context>
chip_gen: v5e
topology: v5e:2x2
jax: 0.10.0
libtpu: 0.0.40
codegen_flags: <defaults>
</compile_context>

<pallas_src>
import functools

import jax
import jax.numpy as jnp
from jax import lax
from jax.experimental import pallas as pl
from jax.experimental.pallas import tpu as pltpu


# --------------------------------------------------------------------------- #
# Pallas kernel: fused recurrent LIF over all timesteps for one sample group
# --------------------------------------------------------------------------- #
def _lif_kernel(z_ref, w_ref, t_ref, v_ref, *, beta, iapp, threshold):
    # z_ref: (1, N, Bg, L)  external input  z_ext
    # w_ref: (1, L, L)      recurrent noisy weight for this sample group
    # t_ref: (1, N, Bg, L)  output spike train T
    # v_ref: (1, N, Bg, L)  output membrane potential V
    n_steps = z_ref.shape[1]
    bg, feat = z_ref.shape[2], z_ref.shape[3]

    w = w_ref[0]                                   # VMEM-resident across the loop
    zeros = jnp.zeros((bg, feat), jnp.float32)
    t_ref[0, 0] = zeros                            # T[:, 0, :] = 0
    v_ref[0, 0] = zeros                            # V[:, 0, :] = 0

    def step(k, carry):
        spk_prev, v_prev = carry
        # inp = z_ext[:, k-1, :] + CFG.Iapp   (+ stddev-0 gaussian noise == 0)
        inp = z_ref[0, k - 1] + iapp
        # recurrent term: previous spikes through the (noisy) weight matrix
        inp = inp + jnp.dot(spk_prev, w, preferred_element_type=jnp.float32)
        # snn.Leaky defaults: threshold=1.0, reset_mechanism="subtract";
        # fast_sigmoid surrogate is a Heaviside in the forward pass.
        reset = (v_prev > threshold).astype(jnp.float32)
        v_new = beta * v_prev + inp - reset * threshold
        spk_new = (v_new > threshold).astype(jnp.float32)
        t_ref[0, k] = spk_new
        v_ref[0, k] = v_new
        return spk_new, v_new

    lax.fori_loop(1, n_steps, step, (zeros, zeros), unroll=True)


def lif_forward(z, w, *, beta, iapp, threshold):
    """z: (S, N, Bg, L) inputs, w: (S, L, L) per-group recurrent weights.

    Returns (T, V), each (S, N, Bg, L)."""
    S, N, Bg, L = z.shape
    assert w.shape == (S, L, L)
    kernel = functools.partial(_lif_kernel, beta=beta, iapp=iapp,
                               threshold=threshold)
    return pl.pallas_call(
        kernel,
        out_shape=(jax.ShapeDtypeStruct((S, N, Bg, L), jnp.float32),
                   jax.ShapeDtypeStruct((S, N, Bg, L), jnp.float32)),
        grid_spec=pltpu.PrefetchScalarGridSpec(
            num_scalar_prefetch=0,
            grid=(S,),
            in_specs=[
                pl.BlockSpec((1, N, Bg, L), lambda s: (s, 0, 0, 0)),
                pl.BlockSpec((1, L, L), lambda s: (s, 0, 0)),
            ],
            out_specs=[
                pl.BlockSpec((1, N, Bg, L), lambda s: (s, 0, 0, 0)),
                pl.BlockSpec((1, N, Bg, L), lambda s: (s, 0, 0, 0)),
            ],
        ),
        compiler_params=pltpu.CompilerParams(
            dimension_semantics=("parallel",)),    # S shards across TCs on v7x
    )(z, w)


# --------------------------------------------------------------------------- #
# Module ports (parameter / noise bookkeeping in plain JAX; hot loop in Pallas)
# --------------------------------------------------------------------------- #
class WeightSampler:
    """Port of WeightSampler: S noisy offsets of one (L, L) weight."""

    def __init__(self, input_dim, output_dim, key):
        # nn.Linear(output_dim, input_dim, bias=False).weight has shape
        # (input_dim, output_dim), init U(-1/sqrt(output_dim), 1/sqrt(output_dim)).
        bound = 1.0 / float(output_dim) ** 0.5
        self.W = jax.random.uniform(key, (input_dim, output_dim), jnp.float32,
                                    -bound, bound)
        self.W_noisy = None
        self.set_params(1, 0.0)

    def set_params(self, S, stddev):
        self.S = S
        self.stddev = stddev

    def noisify(self, key=None):
        # W_noisy: (S, L, L) (the singleton broadcast dim of the torch version is
        # dropped).  Sample 0 is always noise-free; noise is generated only for
        # samples 1..S-1 (no materialized zero tensors / full-tensor scatter).
        if self.S > 1 and self.stddev > 0.0:
            if key is None:
                key = jax.random.PRNGKey(0)
            noise = self.stddev * jax.random.normal(
                key, (self.S - 1,) + self.W.shape, jnp.float32)
            self.W_noisy = jnp.concatenate(
                [self.W[None], self.W[None] + noise], axis=0)
        else:
            self.W_noisy = jnp.broadcast_to(self.W[None], (self.S,) + self.W.shape)


class LIFComplete:
    """Port of LIF_Complete (forward pass only).

    CFG.lif_beta / CFG.Iapp are external config in the PyTorch code; they are
    constructor arguments here.  snn.Leaky defaults (threshold=1.0,
    reset_mechanism="subtract") are used; fast_sigmoid is Heaviside in forward.
    """

    def __init__(self, L, key, *, lif_beta=0.5, iapp=0.25, threshold=1.0):
        self.L = L
        self.W = WeightSampler(L, L, key)
        self.lif_beta = float(lif_beta)
        self.iapp = float(iapp)
        self.threshold = float(threshold)
        self.V = None
        self.INIT = True
        # TODO(synk): fast_sigmoid surrogate *gradient* (backward pass) is not
        # ported; this is a forward-only Pallas implementation.

    def forward(self, z_ext):
        B, N, L = z_ext.shape
        assert L == self.L
        S = self.W.S
        assert B % S == 0, "batch must be divisible by S (WeightSampler view)"
        Bg = B // S
        if self.W.W_noisy is None:
            self.W.noisify()
        w_noisy = self.W.W_noisy                    # (S, L, L)

        # (B, N, L) -> (S, N, Bg, L): consecutive batch blocks of size Bg share a
        # noisy weight sample (matches x.view((S, -1, 1, L)) in the reference).
        z = z_ext.reshape(S, Bg, N, L).transpose(0, 2, 1, 3)
        # NOTE: the reference's `torch.normal(zeros, 0.0)` input noise is
        # identically zero and is therefore skipped.
        T, V = lif_forward(z, w_noisy, beta=self.lif_beta, iapp=self.iapp,
                           threshold=self.threshold)
        self.V = V.transpose(0, 2, 1, 3).reshape(B, N, L)
        return T.transpose(0, 2, 1, 3).reshape(B, N, L)


# --------------------------------------------------------------------------- #
# Pure-JAX reference + demo / correctness check
# --------------------------------------------------------------------------- #
def lif_reference(z_ext, w_noisy, S, *, beta, iapp, threshold):
    B, N, L = z_ext.shape
    Bg = B // S
    V = jnp.zeros((B, L), jnp.float32)
    spk = jnp.zeros((B, L), jnp.float32)
    Ts, Vs = [spk], [V]
    for k in range(1, N):
        rec = jnp.concatenate(
            [jnp.dot(spk[s * Bg:(s + 1) * Bg], w_noisy[s],
                     preferred_element_type=jnp.float32) for s in range(S)],
            axis=0)
        inp = z_ext[:, k - 1, :] + iapp
        inp = inp + rec
        reset = (V > threshold).astype(jnp.float32)
        V = beta * V + inp - reset * threshold
        spk = (V > threshold).astype(jnp.float32)
        Ts.append(spk)
        Vs.append(V)
    return jnp.stack(Ts, axis=1), jnp.stack(Vs, axis=1)


if __name__ == "__main__":
    key = jax.random.PRNGKey(0)
    k_init, k_noise, k_batch = jax.random.split(key, 3)

    L = 128            # feature dim -> lane-dense output tiles
    S, Bg, N = 2, 8, 16
    B = S * Bg         # 16

    model = LIFComplete(L, k_init, lif_beta=0.5, iapp=0.25, threshold=1.0)
    model.W.set_params(S, stddev=0.05)
    model.W.noisify(k_noise)
    # Snap noisy weights to an exact-bf16 grid (multiples of 1/256) so the
    # recurrent matmul is exact on both the MXU and the XLA reference path and
    # the (discontinuous) spike trains can be compared exactly.
    model.W.W_noisy = jnp.round(
        jnp.clip(model.W.W_noisy, -0.99, 0.99) * 256.0) / 256.0

    z_ext = jax.random.normal(k_batch, (B, N, L), jnp.float32)

    T = jax.block_until_ready(model.forward(z_ext))
    assert T.shape == (B, N, L)

    T_ref, V_ref = lif_reference(z_ext, model.W.W_noisy, S,
                                 beta=model.lif_beta, iapp=model.iapp,
                                 threshold=model.threshold)
    assert jnp.allclose(T, T_ref), "spike-train mismatch vs JAX reference"
    assert jnp.allclose(model.V, V_ref, atol=1e-5, rtol=1e-5), "membrane mismatch"

    print("KERNEL_OK")
</pallas_src>

<mosaic_0001>
module attributes {stable_mosaic.version = 11 : i64} {
  func.func @_lif_kernel(%arg0: i32, %arg1: memref<1x16x8x128xf32, #tpu.memory_space<vmem>>, %arg2: memref<1x128x128xf32, #tpu.memory_space<vmem>>, %arg3: memref<1x16x8x128xf32, #tpu.memory_space<vmem>>, %arg4: memref<1x16x8x128xf32, #tpu.memory_space<vmem>>) attributes {dimension_semantics = [#tpu.dimension_semantics<parallel>], iteration_bounds = array<i64: 2>, scalar_prefetch = 0 : i64, scratch_operands = 0 : i64, tpu.core_type = #tpu.core_type<tc>, window_params = [{transform_indices = @transform_0, window_bounds = array<i64: 1, 16, 8, 128>}, {transform_indices = @transform_1, window_bounds = array<i64: 1, 128, 128>}, {transform_indices = @transform_2, window_bounds = array<i64: 1, 16, 8, 128>}, {transform_indices = @transform_3, window_bounds = array<i64: 1, 16, 8, 128>}]} {
    %c0 = arith.constant 0 : index
    %c0_0 = arith.constant 0 : index
    %c0_1 = arith.constant 0 : index
    %0 = vector.load %arg2[%c0, %c0_0, %c0_1] : memref<1x128x128xf32, #tpu.memory_space<vmem>>, vector<1x128x128xf32>
    %1 = vector.shape_cast %0 : vector<1x128x128xf32> to vector<128x128xf32>
    %cst = arith.constant 0.000000e+00 : f32
    %2 = vector.broadcast %cst : f32 to vector<8x128xf32>
    %c0_2 = arith.constant 0 : index
    %c0_3 = arith.constant 0 : index
    %c0_4 = arith.constant 0 : index
    %c0_5 = arith.constant 0 : index
    %3 = vector.load %arg3[%c0_2, %c0_3, %c0_4, %c0_5] : memref<1x16x8x128xf32, #tpu.memory_space<vmem>>, vector<1x1x8x128xf32>
    %4 = vector.shape_cast %3 : vector<1x1x8x128xf32> to vector<8x128xf32>
    %5 = vector.shape_cast %2 : vector<8x128xf32> to vector<1x1x8x128xf32>
    tpu.vector_store %arg3[%c0_2, %c0_3, %c0_4, %c0_5], %5 {strides = array<i32>} : memref<1x16x8x128xf32, #tpu.memory_space<vmem>>, vector<1x1x8x128xf32>,
    %c0_6 = arith.constant 0 : index
    %c0_7 = arith.constant 0 : index
    %c0_8 = arith.constant 0 : index
    %c0_9 = arith.constant 0 : index
    %6 = vector.load %arg4[%c0_6, %c0_7, %c0_8, %c0_9] : memref<1x16x8x128xf32, #tpu.memory_space<vmem>>, vector<1x1x8x128xf32>
    %7 = vector.shape_cast %6 : vector<1x1x8x128xf32> to vector<8x128xf32>
    %8 = vector.shape_cast %2 : vector<8x128xf32> to vector<1x1x8x128xf32>
    tpu.vector_store %arg4[%c0_6, %c0_7, %c0_8, %c0_9], %8 {strides = array<i32>} : memref<1x16x8x128xf32, #tpu.memory_space<vmem>>, vector<1x1x8x128xf32>,
    %c1_i32 = arith.constant 1 : i32
    %c1_i32_10 = arith.constant 1 : i32
    %9 = arith.subi %c1_i32, %c1_i32_10 : i32
    %c0_11 = arith.constant 0 : index
    %10 = arith.index_cast %9 : i32 to index
    %c0_12 = arith.constant 0 : index
    %c0_13 = arith.constant 0 : index
    %11 = vector.load %arg1[%c0_11, %10, %c0_12, %c0_13] : memref<1x16x8x128xf32, #tpu.memory_space<vmem>>, vector<1x1x8x128xf32>
    %12 = vector.shape_cast %11 : vector<1x1x8x128xf32> to vector<8x128xf32>
    %cst_14 = arith.constant 2.500000e-01 : f32
    %13 = vector.broadcast %cst_14 : f32 to vector<8x128xf32>
    %14 = arith.addf %12, %13 : vector<8x128xf32>
    %cst_15 = arith.constant dense<0.000000e+00> : vector<8x128xf32>
    %15 = tpu.matmul %2, %1, %cst_15 {dimension_numbers = #tpu.dot_dimension_numbers<[1], [0], [0], [1], [0, 0, 1, 1], [], []>} : vector<8x128xf32>, vector<128x128xf32>, vector<8x128xf32> -> vector<8x128xf32>
    %16 = arith.addf %14, %15 : vector<8x128xf32>
    %cst_16 = arith.constant 1.000000e+00 : f32
    %17 = vector.broadcast %cst_16 : f32 to vector<8x128xf32>
    %18 = arith.cmpf ogt, %2, %17 : vector<8x128xf32>
    %19 = arith.extui %18 : vector<8x128xi1> to vector<8x128xi32>
    %20 = arith.sitofp %19 : vector<8x128xi32> to vector<8x128xf32>
    %cst_17 = arith.constant 5.000000e-01 : f32
    %21 = vector.broadcast %cst_17 : f32 to vector<8x128xf32>
    %22 = arith.mulf %21, %2 : vector<8x128xf32>
    %23 = arith.addf %22, %16 : vector<8x128xf32>
    %cst_18 = arith.constant 1.000000e+00 : f32
    %24 = vector.broadcast %cst_18 : f32 to vector<8x128xf32>
    %25 = arith.mulf %20, %24 : vector<8x128xf32>
    %26 = arith.subf %23, %25 : vector<8x128xf32>
    %cst_19 = arith.constant 1.000000e+00 : f32
    %27 = vector.broadcast %cst_19 : f32 to vector<8x128xf32>
    %28 = arith.cmpf ogt, %26, %27 : vector<8x128xf32>
    %29 = arith.extui %28 : vector<8x128xi1> to vector<8x128xi32>
    %30 = arith.sitofp %29 : vector<8x128xi32> to vector<8x128xf32>
    %c0_20 = arith.constant 0 : index
    %31 = arith.index_cast %c1_i32 : i32 to index
    %c0_21 = arith.constant 0 : index
    %c0_22 = arith.constant 0 : index
    %32 = vector.load %arg3[%c0_20, %31, %c0_21, %c0_22] : memref<1x16x8x128xf32, #tpu.memory_space<vmem>>, vector<1x1x8x128xf32>
    %33 = vector.shape_cast %32 : vector<1x1x8x128xf32> to vector<8x128xf32>
    %34 = vector.shape_cast %30 : vector<8x128xf32> to vector<1x1x8x128xf32>
    tpu.vector_store %arg3[%c0_20, %31, %c0_21, %c0_22], %34 {strides = array<i32>} : memref<1x16x8x128xf32, #tpu.memory_space<vmem>>, vector<1x1x8x128xf32>,
    %c0_23 = arith.constant 0 : index
    %35 = arith.index_cast %c1_i32 : i32 to index
    %c0_24 = arith.constant 0 : index
    %c0_25 = arith.constant 0 : index
    %36 = vector.load %arg4[%c0_23, %35, %c0_24, %c0_25] : memref<1x16x8x128xf32, #tpu.memory_space<vmem>>, vector<1x1x8x128xf32>
    %37 = vector.shape_cast %36 : vector<1x1x8x128xf32> to vector<8x128xf32>
    %38 = vector.shape_cast %26 : vector<8x128xf32> to vector<1x1x8x128xf32>
    tpu.vector_store %arg4[%c0_23, %35, %c0_24, %c0_25], %38 {strides = array<i32>} : memref<1x16x8x128xf32, #tpu.memory_space<vmem>>, vector<1x1x8x128xf32>,
    %c2_i32 = arith.constant 2 : i32
    %c1_i32_26 = arith.constant 1 : i32
    %39 = arith.subi %c2_i32, %c1_i32_26 : i32
    %c0_27 = arith.constant 0 : index
    %40 = arith.index_cast %39 : i32 to index
    %c0_28 = arith.constant 0 : index
    %c0_29 = arith.constant 0 : index
    %41 = vector.load %arg1[%c0_27, %40, %c0_28, %c0_29] : memref<1x16x8x128xf32, #tpu.memory_space<vmem>>, vector<1x1x8x128xf32>
    %42 = vector.shape_cast %41 : vector<1x1x8x128xf32> to vector<8x128xf32>
    %cst_30 = arith.constant 2.500000e-01 : f32
    %43 = vector.broadcast %cst_30 : f32 to vector<8x128xf32>
    %44 = arith.addf %42, %43 : vector<8x128xf32>
    %cst_31 = arith.constant dense<0.000000e+00> : vector<8x128xf32>
    %45 = tpu.matmul %30, %1, %cst_31 {dimension_numbers = #tpu.dot_dimension_numbers<[1], [0], [0], [1], [0, 0, 1, 1], [], []>} : vector<8x128xf32>, vector<128x128xf32>, vector<8x128xf32> -> vector<8x128xf32>
    %46 = arith.addf %44, %45 : vector<8x128xf32>
    %cst_32 = arith.constant 1.000000e+00 : f32
    %47 = vector.broadcast %cst_32 : f32 to vector<8x128xf32>
    %48 = arith.cmpf ogt, %26, %47 : vector<8x128xf32>
    %49 = arith.extui %48 : vector<8x128xi1> to vector<8x128xi32>
    %50 = arith.sitofp %49 : vector<8x128xi32> to vector<8x128xf32>
    %cst_33 = arith.constant 5.000000e-01 : f32
    %51 = vector.broadcast %cst_33 : f32 to vector<8x128xf32>
    %52 = arith.mulf %51, %26 : vector<8x128xf32>
    %53 = arith.addf %52, %46 : vector<8x128xf32>
    %cst_34 = arith.constant 1.000000e+00 : f32
    %54 = vector.broadcast %cst_34 : f32 to vector<8x128xf32>
    %55 = arith.mulf %50, %54 : vector<8x128xf32>
    %56 = arith.subf %53, %55 : vector<8x128xf32>
    %cst_35 = arith.constant 1.000000e+00 : f32
    %57 = vector.broadcast %cst_35 : f32 to vector<8x128xf32>
    %58 = arith.cmpf ogt, %56, %57 : vector<8x128xf32>
    %59 = arith.extui %58 : vector<8x128xi1> to vector<8x128xi32>
    %60 = arith.sitofp %59 : vector<8x128xi32> to vector<8x128xf32>
    %c0_36 = arith.constant 0 : index
    %61 = arith.index_cast %c2_i32 : i32 to index
    %c0_37 = arith.constant 0 : index
    %c0_38 = arith.constant 0 : index
    %62 = vector.load %arg3[%c0_36, %61, %c0_37, %c0_38] : memref<1x16x8x128xf32, #tpu.memory_space<vmem>>, vector<1x1x8x128xf32>
    %63 = vector.shape_cast %62 : vector<1x1x8x128xf32> to vector<8x128xf32>
    %64 = vector.shape_cast %60 : vector<8x128xf32> to vector<1x1x8x128xf32>
    tpu.vector_store %arg3[%c0_36, %61, %c0_37, %c0_38], %64 {strides = array<i32>} : memref<1x16x8x128xf32, #tpu.memory_space<vmem>>, vector<1x1x8x128xf32>,
    %c0_39 = arith.constant 0 : index
    %65 = arith.index_cast %c2_i32 : i32 to index
    %c0_40 = arith.constant 0 : index
    %c0_41 = arith.constant 0 : index
    %66 = vector.load %arg4[%c0_39, %65, %c0_40, %c0_41] : memref<1x16x8x128xf32, #tpu.memory_space<vmem>>, vector<1x1x8x128xf32>
    %67 = vector.shape_cast %66 : vector<1x1x8x128xf32> to vector<8x128xf32>
    %68 = vector.shape_cast %56 : vector<8x128xf32> to vector<1x1x8x128xf32>
    tpu.vector_store %arg4[%c0_39, %65, %c0_40, %c0_41], %68 {strides = array<i32>} : memref<1x16x8x128xf32, #tpu.memory_space<vmem>>, vector<1x1x8x128xf32>,
    %c3_i32 = arith.constant 3 : i32
    %c1_i32_42 = arith.constant 1 : i32
    %69 = arith.subi %c3_i32, %c1_i32_42 : i32
    %c0_43 = arith.constant 0 : index
    %70 = arith.index_cast %69 : i32 to index
    %c0_44 = arith.constant 0 : index
    %c0_45 = arith.constant 0 : index
    %71 = vector.load %arg1[%c0_43, %70, %c0_44, %c0_45] : memref<1x16x8x128xf32, #tpu.memory_space<vmem>>, vector<1x1x8x128xf32>
    %72 = vector.shape_cast %71 : vector<1x1x8x128xf32> to vector<8x128xf32>
    %cst_46 = arith.constant 2.500000e-01 : f32
    %73 = vector.broadcast %cst_46 : f32 to vector<8x128xf32>
    %74 = arith.addf %72, %73 : vector<8x128xf32>
    %cst_47 = arith.constant dense<0.000000e+00> : vector<8x128xf32>
    %75 = tpu.matmul %60, %1, %cst_47 {dimension_numbers = #tpu.dot_dimension_numbers<[1], [0], [0], [1], [0, 0, 1, 1], [], []>} : vector<8x128xf32>, vector<128x128xf32>, vector<8x128xf32> -> vector<8x128xf32>
    %76 = arith.addf %74, %75 : vector<8x128xf32>
    %cst_48 = arith.constant 1.000000e+00 : f32
    %77 = vector.broadcast %cst_48 : f32 to vector<8x128xf32>
    %78 = arith.cmpf ogt, %56, %77 : vector<8x128xf32>
    %79 = arith.extui %78 : vector<8x128xi1> to vector<8x128xi32>
    %80 = arith.sitofp %79 : vector<8x128xi32> to vector<8x128xf32>
    %cst_49 = arith.constant 5.000000e-01 : f32
    %81 = vector.broadcast %cst_49 : f32 to vector<8x128xf32>
    %82 = arith.mulf %81, %56 : vector<8x128xf32>
    %83 = arith.addf %82, %76 : vector<8x128xf32>
    %cst_50 = arith.constant 1.000000e+00 : f32
    %84 = vector.broadcast %cst_50 : f32 to vector<8x128xf32>
    %85 = arith.mulf %80, %84 : vector<8x128xf32>
    %86 = arith.subf %83, %85 : vector<8x128xf32>
    %cst_51 = arith.constant 1.000000e+00 : f32
    %87 = vector.broadcast %cst_51 : f32 to vector<8x128xf32>
    %88 = arith.cmpf ogt, %86, %87 : vector<8x128xf32>
    %89 = arith.extui %88 : vector<8x128xi1> to vector<8x128xi32>
    %90 = arith.sitofp %89 : vector<8x128xi32> to vector<8x128xf32>
    %c0_52 = arith.constant 0 : index
    %91 = arith.index_cast %c3_i32 : i32 to index
    %c0_53 = arith.constant 0 : index
    %c0_54 = arith.constant 0 : index
    %92 = vector.load %arg3[%c0_52, %91, %c0_53, %c0_54] : memref<1x16x8x128xf32, #tpu.memory_space<vmem>>, vector<1x1x8x128xf32>
    %93 = vector.shape_cast %92 : vector<1x1x8x128xf32> to vector<8x128xf32>
    %94 = vector.shape_cast %90 : vector<8x128xf32> to vector<1x1x8x128xf32>
    tpu.vector_store %arg3[%c0_52, %91, %c0_53, %c0_54], %94 {strides = array<i32>} : memref<1x16x8x128xf32, #tpu.memory_space<vmem>>, vector<1x1x8x128xf32>,
    %c0_55 = arith.constant 0 : index
    %95 = arith.index_cast %c3_i32 : i32 to index
    %c0_56 = arith.constant 0 : index
    %c0_57 = arith.constant 0 : index
    %96 = vector.load %arg4[%c0_55, %95, %c0_56, %c0_57] : memref<1x16x8x128xf32, #tpu.memory_space<vmem>>, vector<1x1x8x128xf32>
    %97 = vector.shape_cast %96 : vector<1x1x8x128xf32> to vector<8x128xf32>
    %98 = vector.shape_cast %86 : vector<8x128xf32> to vector<1x1x8x128xf32>
    tpu.vector_store %arg4[%c0_55, %95, %c0_56, %c0_57], %98 {strides = array<i32>} : memref<1x16x8x128xf32, #tpu.memory_space<vmem>>, vector<1x1x8x128xf32>,
    %c4_i32 = arith.constant 4 : i32
    %c1_i32_58 = arith.constant 1 : i32
    %99 = arith.subi %c4_i32, %c1_i32_58 : i32
    %c0_59 = arith.constant 0 : index
    %100 = arith.index_cast %99 : i32 to index
    %c0_60 = arith.constant 0 : index
    %c0_61 = arith.constant 0 : index
    %101 = vector.load %arg1[%c0_59, %100, %c0_60, %c0_61] : memref<1x16x8x128xf32, #tpu.memory_space<vmem>>, vector<1x1x8x128xf32>
    %102 = vector.shape_cast %101 : vector<1x1x8x128xf32> to vector<8x128xf32>
    %cst_62 = arith.constant 2.500000e-01 : f32
    %103 = vector.broadcast %cst_62 : f32 to vector<8x128xf32>
    %104 = arith.addf %102, %103 : vector<8x128xf32>
    %cst_63 = arith.constant dense<0.000000e+00> : vector<8x128xf32>
    %105 = tpu.matmul %90, %1, %cst_63 {dimension_numbers = #tpu.dot_dimension_numbers<[1], [0], [0], [1], [0, 0, 1, 1], [], []>} : vector<8x128xf32>, vector<128x128xf32>, vector<8x128xf32> -> vector<8x128xf32>
    %106 = arith.addf %104, %105 : vector<8x128xf32>
    %cst_64 = arith.constant 1.000000e+00 : f32
    %107 = vector.broadcast %cst_64 : f32 to vector<8x128xf32>
    %108 = arith.cmpf ogt, %86, %107 : vector<8x128xf32>
    %109 = arith.extui %108 : vector<8x128xi1> to vector<8x128xi32>
    %110 = arith.sitofp %109 : vector<8x128xi32> to vector<8x128xf32>
    %cst_65 = arith.constant 5.000000e-01 : f32
    %111 = vector.broadcast %cst_65 : f32 to vector<8x128xf32>
    %112 = arith.mulf %111, %86 : vector<8x128xf32>
    %113 = arith.addf %112, %106 : vector<8x128xf32>
    %cst_66 = arith.constant 1.000000e+00 : f32
    %114 = vector.broadcast %cst_66 : f32 to vector<8x128xf32>
    %115 = arith.mulf %110, %114 : vector<8x128xf32>
    %116 = arith.subf %113, %115 : vector<8x128xf32>
    %cst_67 = arith.constant 1.000000e+00 : f32
    %117 = vector.broadcast %cst_67 : f32 to vector<8x128xf32>
    %118 = arith.cmpf ogt, %116, %117 : vector<8x128xf32>
    %119 = arith.extui %118 : vector<8x128xi1> to vector<8x128xi32>
    %120 = arith.sitofp %119 : vector<8x128xi32> to vector<8x128xf32>
    %c0_68 = arith.constant 0 : index
    %121 = arith.index_cast %c4_i32 : i32 to index
    %c0_69 = arith.constant 0 : index
    %c0_70 = arith.constant 0 : index
    %122 = vector.load %arg3[%c0_68, %121, %c0_69, %c0_70] : memref<1x16x8x128xf32, #tpu.memory_space<vmem>>, vector<1x1x8x128xf32>
    %123 = vector.shape_cast %122 : vector<1x1x8x128xf32> to vector<8x128xf32>
    %124 = vector.shape_cast %120 : vector<8x128xf32> to vector<1x1x8x128xf32>
    tpu.vector_store %arg3[%c0_68, %121, %c0_69, %c0_70], %124 {strides = array<i32>} : memref<1x16x8x128xf32, #tpu.memory_space<vmem>>, vector<1x1x8x128xf32>,
    %c0_71 = arith.constant 0 : index
    %125 = arith.index_cast %c4_i32 : i32 to index
    %c0_72 = arith.constant 0 : index
    %c0_73 = arith.constant 0 : index
    %126 = vector.load %arg4[%c0_71, %125, %c0_72, %c0_73] : memref<1x16x8x128xf32, #tpu.memory_space<vmem>>, vector<1x1x8x128xf32>
    %127 = vector.shape_cast %126 : vector<1x1x8x128xf32> to vector<8x128xf32>
    %128 = vector.shape_cast %116 : vector<8x128xf32> to vector<1x1x8x128xf32>
    tpu.vector_store %arg4[%c0_71, %125, %c0_72, %c0_73], %128 {strides = array<i32>} : memref<1x16x8x128xf32, #tpu.memory_space<vmem>>, vector<1x1x8x128xf32>,
    %c5_i32 = arith.constant 5 : i32
    %c1_i32_74 = arith.constant 1 : i32
    %129 = arith.subi %c5_i32, %c1_i32_74 : i32
    %c0_75 = arith.constant 0 : index
    %130 = arith.index_cast %129 : i32 to index
    %c0_76 = arith.constant 0 : index
    %c0_77 = arith.constant 0 : index
    %131 = vector.load %arg1[%c0_75, %130, %c0_76, %c0_77] : memref<1x16x8x128xf32, #tpu.memory_space<vmem>>, vector<1x1x8x128xf32>
    %132 = vector.shape_cast %131 : vector<1x1x8x128xf32> to vector<8x128xf32>
    %cst_78 = arith.constant 2.500000e-01 : f32
    %133 = vector.broadcast %cst_78 : f32 to vector<8x128xf32>
    %134 = arith.addf %132, %133 : vector<8x128xf32>
    %cst_79 = arith.constant dense<0.000000e+00> : vector<8x128xf32>
    %135 = tpu.matmul %120, %1, %cst_79 {dimension_numbers = #tpu.dot_dimension_numbers<[1], [0], [0], [1], [0, 0, 1, 1], [], []>} : vector<8x128xf32>, vector<128x128xf32>, vector<8x128xf32> -> vector<8x128xf32>
    %136 = arith.addf %134, %135 : vector<8x128xf32>
    %cst_80 = arith.constant 1.000000e+00 : f32
    %137 = vector.broadcast %cst_80 : f32 to vector<8x128xf32>
    %138 = arith.cmpf ogt, %116, %137 : vector<8x128xf32>
    %139 = arith.extui %138 : vector<8x128xi1> to vector<8x128xi32>
    %140 = arith.sitofp %139 : vector<8x128xi32> to vector<8x128xf32>
    %cst_81 = arith.constant 5.000000e-01 : f32
    %141 = vector.broadcast %cst_81 : f32 to vector<8x128xf32>
    %142 = arith.mulf %141, %116 : vector<8x128xf32>
    %143 = arith.addf %142, %136 : vector<8x128xf32>
    %cst_82 = arith.constant 1.000000e+00 : f32
    %144 = vector.broadcast %cst_82 : f32 to vector<8x128xf32>
    %145 = arith.mulf %140, %144 : vector<8x128xf32>
    %146 = arith.subf %143, %145 : vector<8x128xf32>
    %cst_83 = arith.constant 1.000000e+00 : f32
    %147 = vector.broadcast %cst_83 : f32 to vector<8x128xf32>
    %148 = arith.cmpf ogt, %146, %147 : vector<8x128xf32>
    %149 = arith.extui %148 : vector<8x128xi1> to vector<8x128xi32>
    %150 = arith.sitofp %149 : vector<8x128xi32> to vector<8x128xf32>
    %c0_84 = arith.constant 0 : index
    %151 = arith.index_cast %c5_i32 : i32 to index
    %c0_85 = arith.constant 0 : index
    %c0_86 = arith.constant 0 : index
    %152 = vector.load %arg3[%c0_84, %151, %c0_85, %c0_86] : memref<1x16x8x128xf32, #tpu.memory_space<vmem>>, vector<1x1x8x128xf32>
    %153 = vector.shape_cast %152 : vector<1x1x8x128xf32> to vector<8x128xf32>
    %154 = vector.shape_cast %150 : vector<8x128xf32> to vector<1x1x8x128xf32>
    tpu.vector_store %arg3[%c0_84, %151, %c0_85, %c0_86], %154 {strides = array<i32>} : memref<1x16x8x128xf32, #tpu.memory_space<vmem>>, vector<1x1x8x128xf32>,
    %c0_87 = arith.constant 0 : index
    %155 = arith.index_cast %c5_i32 : i32 to index
    %c0_88 = arith.constant 0 : index
    %c0_89 = arith.constant 0 : index
    %156 = vector.load %arg4[%c0_87, %155, %c0_88, %c0_89] : memref<1x16x8x128xf32, #tpu.memory_space<vmem>>, vector<1x1x8x128xf32>
    %157 = vector.shape_cast %156 : vector<1x1x8x128xf32> to vector<8x128xf32>
    %158 = vector.shape_cast %146 : vector<8x128xf32> to vector<1x1x8x128xf32>
    tpu.vector_store %arg4[%c0_87, %155, %c0_88, %c0_89], %158 {strides = array<i32>} : memref<1x16x8x128xf32, #tpu.memory_space<vmem>>, vector<1x1x8x128xf32>,
    %c6_i32 = arith.constant 6 : i32
    %c1_i32_90 = arith.constant 1 : i32
    %159 = arith.subi %c6_i32, %c1_i32_90 : i32
    %c0_91 = arith.constant 0 : index
    %160 = arith.index_cast %159 : i32 to index
    %c0_92 = arith.constant 0 : index
    %c0_93 = arith.constant 0 : index
    %161 = vector.load %arg1[%c0_91, %160, %c0_92, %c0_93] : memref<1x16x8x128xf32, #tpu.memory_space<vmem>>, vector<1x1x8x128xf32>
    %162 = vector.shape_cast %161 : vector<1x1x8x128xf32> to vector<8x128xf32>
    %cst_94 = arith.constant 2.500000e-01 : f32
    %163 = vector.broadcast %cst_94 : f32 to vector<8x128xf32>
    %164 = arith.addf %162, %163 : vector<8x128xf32>
    %cst_95 = arith.constant dense<0.000000e+00> : vector<8x128xf32>
    %165 = tpu.matmul %150, %1, %cst_95 {dimension_numbers = #tpu.dot_dimension_numbers<[1], [0], [0], [1], [0, 0, 1, 1], [], []>} : vector<8x128xf32>, vector<128x128xf32>, vector<8x128xf32> -> vector<8x128xf32>
    %166 = arith.addf %164, %165 : vector<8x128xf32>
    %cst_96 = arith.constant 1.000000e+00 : f32
    %167 = vector.broadcast %cst_96 : f32 to vector<8x128xf32>
    %168 = arith.cmpf ogt, %146, %167 : vector<8x128xf32>
    %169 = arith.extui %168 : vector<8x128xi1> to vector<8x128xi32>
    %170 = arith.sitofp %169 : vector<8x128xi32> to vector<8x128xf32>
    %cst_97 = arith.constant 5.000000e-01 : f32
    %171 = vector.broadcast %cst_97 : f32 to vector<8x128xf32>
    %172 = arith.mulf %171, %146 : vector<8x128xf32>
    %173 = arith.addf %172, %166 : vector<8x128xf32>
    %cst_98 = arith.constant 1.000000e+00 : f32
    %174 = vector.broadcast %cst_98 : f32 to vector<8x128xf32>
    %175 = arith.mulf %170, %174 : vector<8x128xf32>
    %176 = arith.subf %173, %175 : vector<8x128xf32>
    %cst_99 = arith.constant 1.000000e+00 : f32
    %177 = vector.broadcast %cst_99 : f32 to vector<8x128xf32>
    %178 = arith.cmpf ogt, %176, %177 : vector<8x128xf32>
    %179 = arith.extui %178 : vector<8x128xi1> to vector<8x128xi32>
    %180 = arith.sitofp %179 : vector<8x128xi32> to vector<8x128xf32>
    %c0_100 = arith.constant 0 : index
    %181 = arith.index_cast %c6_i32 : i32 to index
    %c0_101 = arith.constant 0 : index
    %c0_102 = arith.constant 0 : index
    %182 = vector.load %arg3[%c0_100, %181, %c0_101, %c0_102] : memref<1x16x8x128xf32, #tpu.memory_space<vmem>>, vector<1x1x8x128xf32>
    %183 = vector.shape_cast %182 : vector<1x1x8x128xf32> to vector<8x128xf32>
    %184 = vector.shape_cast %180 : vector<8x128xf32> to vector<1x1x8x128xf32>
    tpu.vector_store %arg3[%c0_100, %181, %c0_101, %c0_102], %184 {strides = array<i32>} : memref<1x16x8x128xf32, #tpu.memory_space<vmem>>, vector<1x1x8x128xf32>,
    %c0_103 = arith.constant 0 : index
    %185 = arith.index_cast %c6_i32 : i32 to index
    %c0_104 = arith.constant 0 : index
    %c0_105 = arith.constant 0 : index
    %186 = vector.load %arg4[%c0_103, %185, %c0_104, %c0_105] : memref<1x16x8x128xf32, #tpu.memory_space<vmem>>, vector<1x1x8x128xf32>
    %187 = vector.shape_cast %186 : vector<1x1x8x128xf32> to vector<8x128xf32>
    %188 = vector.shape_cast %176 : vector<8x128xf32> to vector<1x1x8x128xf32>
    tpu.vector_store %arg4[%c0_103, %185, %c0_104, %c0_105], %188 {strides = array<i32>} : memref<1x16x8x128xf32, #tpu.memory_space<vmem>>, vector<1x1x8x128xf32>,
    %c7_i32 = arith.constant 7 : i32
    %c1_i32_106 = arith.constant 1 : i32
    %189 = arith.subi %c7_i32, %c1_i32_106 : i32
    %c0_107 = arith.constant 0 : index
    %190 = arith.index_cast %189 : i32 to index
    %c0_108 = arith.constant 0 : index
    %c0_109 = arith.constant 0 : index
    %191 = vector.load %arg1[%c0_107, %190, %c0_108, %c0_109] : memref<1x16x8x128xf32, #tpu.memory_space<vmem>>, vector<1x1x8x128xf32>
    %192 = vector.shape_cast %191 : vector<1x1x8x128xf32> to vector<8x128xf32>
    %cst_110 = arith.constant 2.500000e-01 : f32
    %193 = vector.broadcast %cst_110 : f32 to vector<8x128xf32>
    %194 = arith.addf %192, %193 : vector<8x128xf32>
    %cst_111 = arith.constant dense<0.000000e+00> : vector<8x128xf32>
    %195 = tpu.matmul %180, %1, %cst_111 {dimension_numbers = #tpu.dot_dimension_numbers<[1], [0], [0], [1], [0, 0, 1, 1], [], []>} : vector<8x128xf32>, vector<128x128xf32>, vector<8x128xf32> -> vector<8x128xf32>
    %196 = arith.addf %194, %195 : vector<8x128xf32>
    %cst_112 = arith.constant 1.000000e+00 : f32
    %197 = vector.broadcast %cst_112 : f32 to vector<8x128xf32>
    %198 = arith.cmpf ogt, %176, %197 : vector<8x128xf32>
    %199 = arith.extui %198 : vector<8x128xi1> to vector<8x128xi32>
    %200 = arith.sitofp %199 : vector<8x128xi32> to vector<8x128xf32>
    %cst_113 = arith.constant 5.000000e-01 : f32
    %201 = vector.broadcast %cst_113 : f32 to vector<8x128xf32>
    %202 = arith.mulf %201, %176 : vector<8x128xf32>
    %203 = arith.addf %202, %196 : vector<8x128xf32>
    %cst_114 = arith.constant 1.000000e+00 : f32
    %204 = vector.broadcast %cst_114 : f32 to vector<8x128xf32>
    %205 = arith.mulf %200, %204 : vector<8x128xf32>
    %206 = arith.subf %203, %205 : vector<8x128xf32>
    %cst_115 = arith.constant 1.000000e+00 : f32
    %207 = vector.broadcast %cst_115 : f32 to vector<8x128xf32>
    %208 = arith.cmpf ogt, %206, %207 : vector<8x128xf32>
    %209 = arith.extui %208 : vector<8x128xi1> to vector<8x128xi32>
    %210 = arith.sitofp %209 : vector<8x128xi32> to vector<8x128xf32>
    %c0_116 = arith.constant 0 : index
    %211 = arith.index_cast %c7_i32 : i32 to index
    %c0_117 = arith.constant 0 : index
    %c0_118 = arith.constant 0 : index
    %212 = vector.load %arg3[%c0_116, %211, %c0_117, %c0_118] : memref<1x16x8x128xf32, #tpu.memory_space<vmem>>, vector<1x1x8x128xf32>
    %213 = vector.shape_cast %212 : vector<1x1x8x128xf32> to vector<8x128xf32>
    %214 = vector.shape_cast %210 : vector<8x128xf32> to vector<1x1x8x128xf32>
    tpu.vector_store %arg3[%c0_116, %211, %c0_117, %c0_118], %214 {strides = array<i32>} : memref<1x16x8x128xf32, #tpu.memory_space<vmem>>, vector<1x1x8x128xf32>,
    %c0_119 = arith.constant 0 : index
    %215 = arith.index_cast %c7_i32 : i32 to index
    %c0_120 = arith.constant 0 : index
    %c0_121 = arith.constant 0 : index
    %216 = vector.load %arg4[%c0_119, %215, %c0_120, %c0_121] : memref<1x16x8x128xf32, #tpu.memory_space<vmem>>, vector<1x1x8x128xf32>
    %217 = vector.shape_cast %216 : vector<1x1x8x128xf32> to vector<8x128xf32>
    %218 = vector.shape_cast %206 : vector<8x128xf32> to vector<1x1x8x128xf32>
    tpu.vector_store %arg4[%c0_119, %215, %c0_120, %c0_121], %218 {strides = array<i32>} : memref<1x16x8x128xf32, #tpu.memory_space<vmem>>, vector<1x1x8x128xf32>,
    %c8_i32 = arith.constant 8 : i32
    %c1_i32_122 = arith.constant 1 : i32
    %219 = arith.subi %c8_i32, %c1_i32_122 : i32
    %c0_123 = arith.constant 0 : index
    %220 = arith.index_cast %219 : i32 to index
    %c0_124 = arith.constant 0 : index
    %c0_125 = arith.constant 0 : index
    %221 = vector.load %arg1[%c0_123, %220, %c0_124, %c0_125] : memref<1x16x8x128xf32, #tpu.memory_space<vmem>>, vector<1x1x8x128xf32>
    %222 = vector.shape_cast %221 : vector<1x1x8x128xf32> to vector<8x128xf32>
    %cst_126 = arith.constant 2.500000e-01 : f32
    %223 = vector.broadcast %cst_126 : f32 to vector<8x128xf32>
    %224 = arith.addf %222, %223 : vector<8x128xf32>
    %cst_127 = arith.constant dense<0.000000e+00> : vector<8x128xf32>
    %225 = tpu.matmul %210, %1, %cst_127 {dimension_numbers = #tpu.dot_dimension_numbers<[1], [0], [0], [1], [0, 0, 1, 1], [], []>} : vector<8x128xf32>, vector<128x128xf32>, vector<8x128xf32> -> vector<8x128xf32>
    %226 = arith.addf %224, %225 : vector<8x128xf32>
    %cst_128 = arith.constant 1.000000e+00 : f32
    %227 = vector.broadcast %cst_128 : f32 to vector<8x128xf32>
    %228 = arith.cmpf ogt, %206, %227 : vector<8x128xf32>
    %229 = arith.extui %228 : vector<8x128xi1> to vector<8x128xi32>
    %230 = arith.sitofp %229 : vector<8x128xi32> to vector<8x128xf32>
    %cst_129 = arith.constant 5.000000e-01 : f32
    %231 = vector.broadcast %cst_129 : f32 to vector<8x128xf32>
    %232 = arith.mulf %231, %206 : vector<8x128xf32>
    %233 = arith.addf %232, %226 : vector<8x128xf32>
    %cst_130 = arith.constant 1.000000e+00 : f32
    %234 = vector.broadcast %cst_130 : f32 to vector<8x128xf32>
    %235 = arith.mulf %230, %234 : vector<8x128xf32>
    %236 = arith.subf %233, %235 : vector<8x128xf32>
    %cst_131 = arith.constant 1.000000e+00 : f32
    %237 = vector.broadcast %cst_131 : f32 to vector<8x128xf32>
    %238 = arith.cmpf ogt, %236, %237 : vector<8x128xf32>
    %239 = arith.extui %238 : vector<8x128xi1> to vector<8x128xi32>
    %240 = arith.sitofp %239 : vector<8x128xi32> to vector<8x128xf32>
    %c0_132 = arith.constant 0 : index
    %241 = arith.index_cast %c8_i32 : i32 to index
    %c0_133 = arith.constant 0 : index
    %c0_134 = arith.constant 0 : index
    %242 = vector.load %arg3[%c0_132, %241, %c0_133, %c0_134] : memref<1x16x8x128xf32, #tpu.memory_space<vmem>>, vector<1x1x8x128xf32>
    %243 = vector.shape_cast %242 : vector<1x1x8x128xf32> to vector<8x128xf32>
    %244 = vector.shape_cast %240 : vector<8x128xf32> to vector<1x1x8x128xf32>
    tpu.vector_store %arg3[%c0_132, %241, %c0_133, %c0_134], %244 {strides = array<i32>} : memref<1x16x8x128xf32, #tpu.memory_space<vmem>>, vector<1x1x8x128xf32>,
    %c0_135 = arith.constant 0 : index
    %245 = arith.index_cast %c8_i32 : i32 to index
    %c0_136 = arith.constant 0 : index
    %c0_137 = arith.constant 0 : index
    %246 = vector.load %arg4[%c0_135, %245, %c0_136, %c0_137] : memref<1x16x8x128xf32, #tpu.memory_space<vmem>>, vector<1x1x8x128xf32>
    %247 = vector.shape_cast %246 : vector<1x1x8x128xf32> to vector<8x128xf32>
    %248 = vector.shape_cast %236 : vector<8x128xf32> to vector<1x1x8x128xf32>
    tpu.vector_store %arg4[%c0_135, %245, %c0_136, %c0_137], %248 {strides = array<i32>} : memref<1x16x8x128xf32, #tpu.memory_space<vmem>>, vector<1x1x8x128xf32>,
    %c9_i32 = arith.constant 9 : i32
    %c1_i32_138 = arith.constant 1 : i32
    %249 = arith.subi %c9_i32, %c1_i32_138 : i32
    %c0_139 = arith.constant 0 : index
    %250 = arith.index_cast %249 : i32 to index
    %c0_140 = arith.constant 0 : index
    %c0_141 = arith.constant 0 : index
    %251 = vector.load %arg1[%c0_139, %250, %c0_140, %c0_141] : memref<1x16x8x128xf32, #tpu.memory_space<vmem>>, vector<1x1x8x128xf32>
    %252 = vector.shape_cast %251 : vector<1x1x8x128xf32> to vector<8x128xf32>
    %cst_142 = arith.constant 2.500000e-01 : f32
    %253 = vector.broadcast %cst_142 : f32 to vector<8x128xf32>
    %254 = arith.addf %252, %253 : vector<8x128xf32>
    %cst_143 = arith.constant dense<0.000000e+00> : vector<8x128xf32>
    %255 = tpu.matmul %240, %1, %cst_143 {dimension_numbers = #tpu.dot_dimension_numbers<[1], [0], [0], [1], [0, 0, 1, 1], [], []>} : vector<8x128xf32>, vector<128x128xf32>, vector<8x128xf32> -> vector<8x128xf32>
    %256 = arith.addf %254, %255 : vector<8x128xf32>
    %cst_144 = arith.constant 1.000000e+00 : f32
    %257 = vector.broadcast %cst_144 : f32 to vector<8x128xf32>
    %258 = arith.cmpf ogt, %236, %257 : vector<8x128xf32>
    %259 = arith.extui %258 : vector<8x128xi1> to vector<8x128xi32>
    %260 = arith.sitofp %259 : vector<8x128xi32> to vector<8x128xf32>
    %cst_145 = arith.constant 5.000000e-01 : f32
    %261 = vector.broadcast %cst_145 : f32 to vector<8x128xf32>
    %262 = arith.mulf %261, %236 : vector<8x128xf32>
    %263 = arith.addf %262, %256 : vector<8x128xf32>
    %cst_146 = arith.constant 1.000000e+00 : f32
    %264 = vector.broadcast %cst_146 : f32 to vector<8x128xf32>
    %265 = arith.mulf %260, %264 : vector<8x128xf32>
    %266 = arith.subf %263, %265 : vector<8x128xf32>
    %cst_147 = arith.constant 1.000000e+00 : f32
    %267 = vector.broadcast %cst_147 : f32 to vector<8x128xf32>
    %268 = arith.cmpf ogt, %266, %267 : vector<8x128xf32>
    %269 = arith.extui %268 : vector<8x128xi1> to vector<8x128xi32>
    %270 = arith.sitofp %269 : vector<8x128xi32> to vector<8x128xf32>
    %c0_148 = arith.constant 0 : index
    %271 = arith.index_cast %c9_i32 : i32 to index
    %c0_149 = arith.constant 0 : index
    %c0_150 = arith.constant 0 : index
    %272 = vector.load %arg3[%c0_148, %271, %c0_149, %c0_150] : memref<1x16x8x128xf32, #tpu.memory_space<vmem>>, vector<1x1x8x128xf32>
    %273 = vector.shape_cast %272 : vector<1x1x8x128xf32> to vector<8x128xf32>
    %274 = vector.shape_cast %270 : vector<8x128xf32> to vector<1x1x8x128xf32>
    tpu.vector_store %arg3[%c0_148, %271, %c0_149, %c0_150], %274 {strides = array<i32>} : memref<1x16x8x128xf32, #tpu.memory_space<vmem>>, vector<1x1x8x128xf32>,
    %c0_151 = arith.constant 0 : index
    %275 = arith.index_cast %c9_i32 : i32 to index
    %c0_152 = arith.constant 0 : index
    %c0_153 = arith.constant 0 : index
    %276 = vector.load %arg4[%c0_151, %275, %c0_152, %c0_153] : memref<1x16x8x128xf32, #tpu.memory_space<vmem>>, vector<1x1x8x128xf32>
    %277 = vector.shape_cast %276 : vector<1x1x8x128xf32> to vector<8x128xf32>
    %278 = vector.shape_cast %266 : vector<8x128xf32> to vector<1x1x8x128xf32>
    tpu.vector_store %arg4[%c0_151, %275, %c0_152, %c0_153], %278 {strides = array<i32>} : memref<1x16x8x128xf32, #tpu.memory_space<vmem>>, vector<1x1x8x128xf32>,
    %c10_i32 = arith.constant 10 : i32
    %c1_i32_154 = arith.constant 1 : i32
    %279 = arith.subi %c10_i32, %c1_i32_154 : i32
    %c0_155 = arith.constant 0 : index
    %280 = arith.index_cast %279 : i32 to index
    %c0_156 = arith.constant 0 : index
    %c0_157 = arith.constant 0 : index
    %281 = vector.load %arg1[%c0_155, %280, %c0_156, %c0_157] : memref<1x16x8x128xf32, #tpu.memory_space<vmem>>, vector<1x1x8x128xf32>
    %282 = vector.shape_cast %281 : vector<1x1x8x128xf32> to vector<8x128xf32>
    %cst_158 = arith.constant 2.500000e-01 : f32
    %283 = vector.broadcast %cst_158 : f32 to vector<8x128xf32>
    %284 = arith.addf %282, %283 : vector<8x128xf32>
    %cst_159 = arith.constant dense<0.000000e+00> : vector<8x128xf32>
    %285 = tpu.matmul %270, %1, %cst_159 {dimension_numbers = #tpu.dot_dimension_numbers<[1], [0], [0], [1], [0, 0, 1, 1], [], []>} : vector<8x128xf32>, vector<128x128xf32>, vector<8x128xf32> -> vector<8x128xf32>
    %286 = arith.addf %284, %285 : vector<8x128xf32>
    %cst_160 = arith.constant 1.000000e+00 : f32
    %287 = vector.broadcast %cst_160 : f32 to vector<8x128xf32>
    %288 = arith.cmpf ogt, %266, %287 : vector<8x128xf32>
    %289 = arith.extui %288 : vector<8x128xi1> to vector<8x128xi32>
    %290 = arith.sitofp %289 : vector<8x128xi32> to vector<8x128xf32>
    %cst_161 = arith.constant 5.000000e-01 : f32
    %291 = vector.broadcast %cst_161 : f32 to vector<8x128xf32>
    %292 = arith.mulf %291, %266 : vector<8x128xf32>
    %293 = arith.addf %292, %286 : vector<8x128xf32>
    %cst_162 = arith.constant 1.000000e+00 : f32
    %294 = vector.broadcast %cst_162 : f32 to vector<8x128xf32>
    %295 = arith.mulf %290, %294 : vector<8x128xf32>
    %296 = arith.subf %293, %295 : vector<8x128xf32>
    %cst_163 = arith.constant 1.000000e+00 : f32
    %297 = vector.broadcast %cst_163 : f32 to vector<8x128xf32>
    %298 = arith.cmpf ogt, %296, %297 : vector<8x128xf32>
    %299 = arith.extui %298 : vector<8x128xi1> to vector<8x128xi32>
    %300 = arith.sitofp %299 : vector<8x128xi32> to vector<8x128xf32>
    %c0_164 = arith.constant 0 : index
    %301 = arith.index_cast %c10_i32 : i32 to index
    %c0_165 = arith.constant 0 : index
    %c0_166 = arith.constant 0 : index
    %302 = vector.load %arg3[%c0_164, %301, %c0_165, %c0_166] : memref<1x16x8x128xf32, #tpu.memory_space<vmem>>, vector<1x1x8x128xf32>
    %303 = vector.shape_cast %302 : vector<1x1x8x128xf32> to vector<8x128xf32>
    %304 = vector.shape_cast %300 : vector<8x128xf32> to vector<1x1x8x128xf32>
    tpu.vector_store %arg3[%c0_164, %301, %c0_165, %c0_166], %304 {strides = array<i32>} : memref<1x16x8x128xf32, #tpu.memory_space<vmem>>, vector<1x1x8x128xf32>,
    %c0_167 = arith.constant 0 : index
    %305 = arith.index_cast %c10_i32 : i32 to index
    %c0_168 = arith.constant 0 : index
    %c0_169 = arith.constant 0 : index
    %306 = vector.load %arg4[%c0_167, %305, %c0_168, %c0_169] : memref<1x16x8x128xf32, #tpu.memory_space<vmem>>, vector<1x1x8x128xf32>
    %307 = vector.shape_cast %306 : vector<1x1x8x128xf32> to vector<8x128xf32>
    %308 = vector.shape_cast %296 : vector<8x128xf32> to vector<1x1x8x128xf32>
    tpu.vector_store %arg4[%c0_167, %305, %c0_168, %c0_169], %308 {strides = array<i32>} : memref<1x16x8x128xf32, #tpu.memory_space<vmem>>, vector<1x1x8x128xf32>,
    %c11_i32 = arith.constant 11 : i32
    %c1_i32_170 = arith.constant 1 : i32
    %309 = arith.subi %c11_i32, %c1_i32_170 : i32
    %c0_171 = arith.constant 0 : index
    %310 = arith.index_cast %309 : i32 to index
    %c0_172 = arith.constant 0 : index
    %c0_173 = arith.constant 0 : index
    %311 = vector.load %arg1[%c0_171, %310, %c0_172, %c0_173] : memref<1x16x8x128xf32, #tpu.memory_space<vmem>>, vector<1x1x8x128xf32>
    %312 = vector.shape_cast %311 : vector<1x1x8x128xf32> to vector<8x128xf32>
    %cst_174 = arith.constant 2.500000e-01 : f32
    %313 = vector.broadcast %cst_174 : f32 to vector<8x128xf32>
    %314 = arith.addf %312, %313 : vector<8x128xf32>
    %cst_175 = arith.constant dense<0.000000e+00> : vector<8x128xf32>
    %315 = tpu.matmul %300, %1, %cst_175 {dimension_numbers = #tpu.dot_dimension_numbers<[1], [0], [0], [1], [0, 0, 1, 1], [], []>} : vector<8x128xf32>, vector<128x128xf32>, vector<8x128xf32> -> vector<8x128xf32>
    %316 = arith.addf %314, %315 : vector<8x128xf32>
    %cst_176 = arith.constant 1.000000e+00 : f32
    %317 = vector.broadcast %cst_176 : f32 to vector<8x128xf32>
    %318 = arith.cmpf ogt, %296, %317 : vector<8x128xf32>
    %319 = arith.extui %318 : vector<8x128xi1> to vector<8x128xi32>
    %320 = arith.sitofp %319 : vector<8x128xi32> to vector<8x128xf32>
    %cst_177 = arith.constant 5.000000e-01 : f32
    %321 = vector.broadcast %cst_177 : f32 to vector<8x128xf32>
    %322 = arith.mulf %321, %296 : vector<8x128xf32>
    %323 = arith.addf %322, %316 : vector<8x128xf32>
    %cst_178 = arith.constant 1.000000e+00 : f32
    %324 = vector.broadcast %cst_178 : f32 to vector<8x128xf32>
    %325 = arith.mulf %320, %324 : vector<8x128xf32>
    %326 = arith.subf %323, %325 : vector<8x128xf32>
    %cst_179 = arith.constant 1.000000e+00 : f32
    %327 = vector.broadcast %cst_179 : f32 to vector<8x128xf32>
    %328 = arith.cmpf ogt, %326, %327 : vector<8x128xf32>
    %329 = arith.extui %328 : vector<8x128xi1> to vector<8x128xi32>
    %330 = arith.sitofp %329 : vector<8x128xi32> to vector<8x128xf32>
    %c0_180 = arith.constant 0 : index
    %331 = arith.index_cast %c11_i32 : i32 to index
    %c0_181 = arith.constant 0 : index
    %c0_182 = arith.constant 0 : index
    %332 = vector.load %arg3[%c0_180, %331, %c0_181, %c0_182] : memref<1x16x8x128xf32, #tpu.memory_space<vmem>>, vector<1x1x8x128xf32>
    %333 = vector.shape_cast %332 : vector<1x1x8x128xf32> to vector<8x128xf32>
    %334 = vector.shape_cast %330 : vector<8x128xf32> to vector<1x1x8x128xf32>
    tpu.vector_store %arg3[%c0_180, %331, %c0_181, %c0_182], %334 {strides = array<i32>} : memref<1x16x8x128xf32, #tpu.memory_space<vmem>>, vector<1x1x8x128xf32>,
    %c0_183 = arith.constant 0 : index
    %335 = arith.index_cast %c11_i32 : i32 to index
    %c0_184 = arith.constant 0 : index
    %c0_185 = arith.constant 0 : index
    %336 = vector.load %arg4[%c0_183, %335, %c0_184, %c0_185] : memref<1x16x8x128xf32, #tpu.memory_space<vmem>>, vector<1x1x8x128xf32>
    %337 = vector.shape_cast %336 : vector<1x1x8x128xf32> to vector<8x128xf32>
    %338 = vector.shape_cast %326 : vector<8x128xf32> to vector<1x1x8x128xf32>
    tpu.vector_store %arg4[%c0_183, %335, %c0_184, %c0_185], %338 {strides = array<i32>} : memref<1x16x8x128xf32, #tpu.memory_space<vmem>>, vector<1x1x8x128xf32>,
    %c12_i32 = arith.constant 12 : i32
    %c1_i32_186 = arith.constant 1 : i32
    %339 = arith.subi %c12_i32, %c1_i32_186 : i32
    %c0_187 = arith.constant 0 : index
    %340 = arith.index_cast %339 : i32 to index
    %c0_188 = arith.constant 0 : index
    %c0_189 = arith.constant 0 : index
    %341 = vector.load %arg1[%c0_187, %340, %c0_188, %c0_189] : memref<1x16x8x128xf32, #tpu.memory_space<vmem>>, vector<1x1x8x128xf32>
    %342 = vector.shape_cast %341 : vector<1x1x8x128xf32> to vector<8x128xf32>
    %cst_190 = arith.constant 2.500000e-01 : f32
    %343 = vector.broadcast %cst_190 : f32 to vector<8x128xf32>
    %344 = arith.addf %342, %343 : vector<8x128xf32>
    %cst_191 = arith.constant dense<0.000000e+00> : vector<8x128xf32>
    %345 = tpu.matmul %330, %1, %cst_191 {dimension_numbers = #tpu.dot_dimension_numbers<[1], [0], [0], [1], [0, 0, 1, 1], [], []>} : vector<8x128xf32>, vector<128x128xf32>, vector<8x128xf32> -> vector<8x128xf32>
    %346 = arith.addf %344, %345 : vector<8x128xf32>
    %cst_192 = arith.constant 1.000000e+00 : f32
    %347 = vector.broadcast %cst_192 : f32 to vector<8x128xf32>
    %348 = arith.cmpf ogt, %326, %347 : vector<8x128xf32>
    %349 = arith.extui %348 : vector<8x128xi1> to vector<8x128xi32>
    %350 = arith.sitofp %349 : vector<8x128xi32> to vector<8x128xf32>
    %cst_193 = arith.constant 5.000000e-01 : f32
    %351 = vector.broadcast %cst_193 : f32 to vector<8x128xf32>
    %352 = arith.mulf %351, %326 : vector<8x128xf32>
    %353 = arith.addf %352, %346 : vector<8x128xf32>
    %cst_194 = arith.constant 1.000000e+00 : f32
    %354 = vector.broadcast %cst_194 : f32 to vector<8x128xf32>
    %355 = arith.mulf %350, %354 : vector<8x128xf32>
    %356 = arith.subf %353, %355 : vector<8x128xf32>
    %cst_195 = arith.constant 1.000000e+00 : f32
    %357 = vector.broadcast %cst_195 : f32 to vector<8x128xf32>
    %358 = arith.cmpf ogt, %356, %357 : vector<8x128xf32>
    %359 = arith.extui %358 : vector<8x128xi1> to vector<8x128xi32>
    %360 = arith.sitofp %359 : vector<8x128xi32> to vector<8x128xf32>
    %c0_196 = arith.constant 0 : index
    %361 = arith.index_cast %c12_i32 : i32 to index
    %c0_197 = arith.constant 0 : index
    %c0_198 = arith.constant 0 : index
    %362 = vector.load %arg3[%c0_196, %361, %c0_197, %c0_198] : memref<1x16x8x128xf32, #tpu.memory_space<vmem>>, vector<1x1x8x128xf32>
    %363 = vector.shape_cast %362 : vector<1x1x8x128xf32> to vector<8x128xf32>
    %364 = vector.shape_cast %360 : vector<8x128xf32> to vector<1x1x8x128xf32>
    tpu.vector_store %arg3[%c0_196, %361, %c0_197, %c0_198], %364 {strides = array<i32>} : memref<1x16x8x128xf32, #tpu.memory_space<vmem>>, vector<1x1x8x128xf32>,
    %c0_199 = arith.constant 0 : index
    %365 = arith.index_cast %c12_i32 : i32 to index
    %c0_200 = arith.constant 0 : index
    %c0_201 = arith.constant 0 : index
    %366 = vector.load %arg4[%c0_199, %365, %c0_200, %c0_201] : memref<1x16x8x128xf32, #tpu.memory_space<vmem>>, vector<1x1x8x128xf32>
    %367 = vector.shape_cast %366 : vector<1x1x8x128xf32> to vector<8x128xf32>
    %368 = vector.shape_cast %356 : vector<8x128xf32> to vector<1x1x8x128xf32>
    tpu.vector_store %arg4[%c0_199, %365, %c0_200, %c0_201], %368 {strides = array<i32>} : memref<1x16x8x128xf32, #tpu.memory_space<vmem>>, vector<1x1x8x128xf32>,
    %c13_i32 = arith.constant 13 : i32
    %c1_i32_202 = arith.constant 1 : i32
    %369 = arith.subi %c13_i32, %c1_i32_202 : i32
    %c0_203 = arith.constant 0 : index
    %370 = arith.index_cast %369 : i32 to index
    %c0_204 = arith.constant 0 : index
    %c0_205 = arith.constant 0 : index
    %371 = vector.load %arg1[%c0_203, %370, %c0_204, %c0_205] : memref<1x16x8x128xf32, #tpu.memory_space<vmem>>, vector<1x1x8x128xf32>
    %372 = vector.shape_cast %371 : vector<1x1x8x128xf32> to vector<8x128xf32>
    %cst_206 = arith.constant 2.500000e-01 : f32
    %373 = vector.broadcast %cst_206 : f32 to vector<8x128xf32>
    %374 = arith.addf %372, %373 : vector<8x128xf32>
    %cst_207 = arith.constant dense<0.000000e+00> : vector<8x128xf32>
    %375 = tpu.matmul %360, %1, %cst_207 {dimension_numbers = #tpu.dot_dimension_numbers<[1], [0], [0], [1], [0, 0, 1, 1], [], []>} : vector<8x128xf32>, vector<128x128xf32>, vector<8x128xf32> -> vector<8x128xf32>
    %376 = arith.addf %374, %375 : vector<8x128xf32>
    %cst_208 = arith.constant 1.000000e+00 : f32
    %377 = vector.broadcast %cst_208 : f32 to vector<8x128xf32>
    %378 = arith.cmpf ogt, %356, %377 : vector<8x128xf32>
    %379 = arith.extui %378 : vector<8x128xi1> to vector<8x128xi32>
    %380 = arith.sitofp %379 : vector<8x128xi32> to vector<8x128xf32>
    %cst_209 = arith.constant 5.000000e-01 : f32
    %381 = vector.broadcast %cst_209 : f32 to vector<8x128xf32>
    %382 = arith.mulf %381, %356 : vector<8x128xf32>
    %383 = arith.addf %382, %376 : vector<8x128xf32>
    %cst_210 = arith.constant 1.000000e+00 : f32
    %384 = vector.broadcast %cst_210 : f32 to vector<8x128xf32>
    %385 = arith.mulf %380, %384 : vector<8x128xf32>
    %386 = arith.subf %383, %385 : vector<8x128xf32>
    %cst_211 = arith.constant 1.000000e+00 : f32
    %387 = vector.broadcast %cst_211 : f32 to vector<8x128xf32>
    %388 = arith.cmpf ogt, %386, %387 : vector<8x128xf32>
    %389 = arith.extui %388 : vector<8x128xi1> to vector<8x128xi32>
    %390 = arith.sitofp %389 : vector<8x128xi32> to vector<8x128xf32>
    %c0_212 = arith.constant 0 : index
    %391 = arith.index_cast %c13_i32 : i32 to index
    %c0_213 = arith.constant 0 : index
    %c0_214 = arith.constant 0 : index
    %392 = vector.load %arg3[%c0_212, %391, %c0_213, %c0_214] : memref<1x16x8x128xf32, #tpu.memory_space<vmem>>, vector<1x1x8x128xf32>
    %393 = vector.shape_cast %392 : vector<1x1x8x128xf32> to vector<8x128xf32>
    %394 = vector.shape_cast %390 : vector<8x128xf32> to vector<1x1x8x128xf32>
    tpu.vector_store %arg3[%c0_212, %391, %c0_213, %c0_214], %394 {strides = array<i32>} : memref<1x16x8x128xf32, #tpu.memory_space<vmem>>, vector<1x1x8x128xf32>,
    %c0_215 = arith.constant 0 : index
    %395 = arith.index_cast %c13_i32 : i32 to index
    %c0_216 = arith.constant 0 : index
    %c0_217 = arith.constant 0 : index
    %396 = vector.load %arg4[%c0_215, %395, %c0_216, %c0_217] : memref<1x16x8x128xf32, #tpu.memory_space<vmem>>, vector<1x1x8x128xf32>
    %397 = vector.shape_cast %396 : vector<1x1x8x128xf32> to vector<8x128xf32>
    %398 = vector.shape_cast %386 : vector<8x128xf32> to vector<1x1x8x128xf32>
    tpu.vector_store %arg4[%c0_215, %395, %c0_216, %c0_217], %398 {strides = array<i32>} : memref<1x16x8x128xf32, #tpu.memory_space<vmem>>, vector<1x1x8x128xf32>,
    %c14_i32 = arith.constant 14 : i32
    %c1_i32_218 = arith.constant 1 : i32
    %399 = arith.subi %c14_i32, %c1_i32_218 : i32
    %c0_219 = arith.constant 0 : index
    %400 = arith.index_cast %399 : i32 to index
    %c0_220 = arith.constant 0 : index
    %c0_221 = arith.constant 0 : index
    %401 = vector.load %arg1[%c0_219, %400, %c0_220, %c0_221] : memref<1x16x8x128xf32, #tpu.memory_space<vmem>>, vector<1x1x8x128xf32>
    %402 = vector.shape_cast %401 : vector<1x1x8x128xf32> to vector<8x128xf32>
    %cst_222 = arith.constant 2.500000e-01 : f32
    %403 = vector.broadcast %cst_222 : f32 to vector<8x128xf32>
    %404 = arith.addf %402, %403 : vector<8x128xf32>
    %cst_223 = arith.constant dense<0.000000e+00> : vector<8x128xf32>
    %405 = tpu.matmul %390, %1, %cst_223 {dimension_numbers = #tpu.dot_dimension_numbers<[1], [0], [0], [1], [0, 0, 1, 1], [], []>} : vector<8x128xf32>, vector<128x128xf32>, vector<8x128xf32> -> vector<8x128xf32>
    %406 = arith.addf %404, %405 : vector<8x128xf32>
    %cst_224 = arith.constant 1.000000e+00 : f32
    %407 = vector.broadcast %cst_224 : f32 to vector<8x128xf32>
    %408 = arith.cmpf ogt, %386, %407 : vector<8x128xf32>
    %409 = arith.extui %408 : vector<8x128xi1> to vector<8x128xi32>
    %410 = arith.sitofp %409 : vector<8x128xi32> to vector<8x128xf32>
    %cst_225 = arith.constant 5.000000e-01 : f32
    %411 = vector.broadcast %cst_225 : f32 to vector<8x128xf32>
    %412 = arith.mulf %411, %386 : vector<8x128xf32>
    %413 = arith.addf %412, %406 : vector<8x128xf32>
    %cst_226 = arith.constant 1.000000e+00 : f32
    %414 = vector.broadcast %cst_226 : f32 to vector<8x128xf32>
    %415 = arith.mulf %410, %414 : vector<8x128xf32>
    %416 = arith.subf %413, %415 : vector<8x128xf32>
    %cst_227 = arith.constant 1.000000e+00 : f32
    %417 = vector.broadcast %cst_227 : f32 to vector<8x128xf32>
    %418 = arith.cmpf ogt, %416, %417 : vector<8x128xf32>
    %419 = arith.extui %418 : vector<8x128xi1> to vector<8x128xi32>
    %420 = arith.sitofp %419 : vector<8x128xi32> to vector<8x128xf32>
    %c0_228 = arith.constant 0 : index
    %421 = arith.index_cast %c14_i32 : i32 to index
    %c0_229 = arith.constant 0 : index
    %c0_230 = arith.constant 0 : index
    %422 = vector.load %arg3[%c0_228, %421, %c0_229, %c0_230] : memref<1x16x8x128xf32, #tpu.memory_space<vmem>>, vector<1x1x8x128xf32>
    %423 = vector.shape_cast %422 : vector<1x1x8x128xf32> to vector<8x128xf32>
    %424 = vector.shape_cast %420 : vector<8x128xf32> to vector<1x1x8x128xf32>
    tpu.vector_store %arg3[%c0_228, %421, %c0_229, %c0_230], %424 {strides = array<i32>} : memref<1x16x8x128xf32, #tpu.memory_space<vmem>>, vector<1x1x8x128xf32>,
    %c0_231 = arith.constant 0 : index
    %425 = arith.index_cast %c14_i32 : i32 to index
    %c0_232 = arith.constant 0 : index
    %c0_233 = arith.constant 0 : index
    %426 = vector.load %arg4[%c0_231, %425, %c0_232, %c0_233] : memref<1x16x8x128xf32, #tpu.memory_space<vmem>>, vector<1x1x8x128xf32>
    %427 = vector.shape_cast %426 : vector<1x1x8x128xf32> to vector<8x128xf32>
    %428 = vector.shape_cast %416 : vector<8x128xf32> to vector<1x1x8x128xf32>
    tpu.vector_store %arg4[%c0_231, %425, %c0_232, %c0_233], %428 {strides = array<i32>} : memref<1x16x8x128xf32, #tpu.memory_space<vmem>>, vector<1x1x8x128xf32>,
    %c15_i32 = arith.constant 15 : i32
    %c1_i32_234 = arith.constant 1 : i32
    %429 = arith.subi %c15_i32, %c1_i32_234 : i32
    %c0_235 = arith.constant 0 : index
    %430 = arith.index_cast %429 : i32 to index
    %c0_236 = arith.constant 0 : index
    %c0_237 = arith.constant 0 : index
    %431 = vector.load %arg1[%c0_235, %430, %c0_236, %c0_237] : memref<1x16x8x128xf32, #tpu.memory_space<vmem>>, vector<1x1x8x128xf32>
    %432 = vector.shape_cast %431 : vector<1x1x8x128xf32> to vector<8x128xf32>
    %cst_238 = arith.constant 2.500000e-01 : f32
    %433 = vector.broadcast %cst_238 : f32 to vector<8x128xf32>
    %434 = arith.addf %432, %433 : vector<8x128xf32>
    %cst_239 = arith.constant dense<0.000000e+00> : vector<8x128xf32>
    %435 = tpu.matmul %420, %1, %cst_239 {dimension_numbers = #tpu.dot_dimension_numbers<[1], [0], [0], [1], [0, 0, 1, 1], [], []>} : vector<8x128xf32>, vector<128x128xf32>, vector<8x128xf32> -> vector<8x128xf32>
    %436 = arith.addf %434, %435 : vector<8x128xf32>
    %cst_240 = arith.constant 1.000000e+00 : f32
    %437 = vector.broadcast %cst_240 : f32 to vector<8x128xf32>
    %438 = arith.cmpf ogt, %416, %437 : vector<8x128xf32>
    %439 = arith.extui %438 : vector<8x128xi1> to vector<8x128xi32>
    %440 = arith.sitofp %439 : vector<8x128xi32> to vector<8x128xf32>
    %cst_241 = arith.constant 5.000000e-01 : f32
    %441 = vector.broadcast %cst_241 : f32 to vector<8x128xf32>
    %442 = arith.mulf %441, %416 : vector<8x128xf32>
    %443 = arith.addf %442, %436 : vector<8x128xf32>
    %cst_242 = arith.constant 1.000000e+00 : f32
    %444 = vector.broadcast %cst_242 : f32 to vector<8x128xf32>
    %445 = arith.mulf %440, %444 : vector<8x128xf32>
    %446 = arith.subf %443, %445 : vector<8x128xf32>
    %cst_243 = arith.constant 1.000000e+00 : f32
    %447 = vector.broadcast %cst_243 : f32 to vector<8x128xf32>
    %448 = arith.cmpf ogt, %446, %447 : vector<8x128xf32>
    %449 = arith.extui %448 : vector<8x128xi1> to vector<8x128xi32>
    %450 = arith.sitofp %449 : vector<8x128xi32> to vector<8x128xf32>
    %c0_244 = arith.constant 0 : index
    %451 = arith.index_cast %c15_i32 : i32 to index
    %c0_245 = arith.constant 0 : index
    %c0_246 = arith.constant 0 : index
    %452 = vector.load %arg3[%c0_244, %451, %c0_245, %c0_246] : memref<1x16x8x128xf32, #tpu.memory_space<vmem>>, vector<1x1x8x128xf32>
    %453 = vector.shape_cast %452 : vector<1x1x8x128xf32> to vector<8x128xf32>
    %454 = vector.shape_cast %450 : vector<8x128xf32> to vector<1x1x8x128xf32>
    tpu.vector_store %arg3[%c0_244, %451, %c0_245, %c0_246], %454 {strides = array<i32>} : memref<1x16x8x128xf32, #tpu.memory_space<vmem>>, vector<1x1x8x128xf32>,
    %c0_247 = arith.constant 0 : index
    %455 = arith.index_cast %c15_i32 : i32 to index
    %c0_248 = arith.constant 0 : index
    %c0_249 = arith.constant 0 : index
    %456 = vector.load %arg4[%c0_247, %455, %c0_248, %c0_249] : memref<1x16x8x128xf32, #tpu.memory_space<vmem>>, vector<1x1x8x128xf32>
    %457 = vector.shape_cast %456 : vector<1x1x8x128xf32> to vector<8x128xf32>
    %458 = vector.shape_cast %446 : vector<8x128xf32> to vector<1x1x8x128xf32>
    tpu.vector_store %arg4[%c0_247, %455, %c0_248, %c0_249], %458 {strides = array<i32>} : memref<1x16x8x128xf32, #tpu.memory_space<vmem>>, vector<1x1x8x128xf32>,
    %c15_i32_250 = arith.constant 15 : i32
    return
  }
  func.func @transform_0(%arg0: i32) -> (i32, i32, i32, i32) {
    %c0_i32 = arith.constant 0 : i32
    %c0_i32_0 = arith.constant 0 : i32
    %c0_i32_1 = arith.constant 0 : i32
    %c0_i32_2 = arith.constant 0 : i32
    return %arg0, %c0_i32, %c0_i32_0, %c0_i32_1 : i32, i32, i32, i32
  }
  func.func @transform_1(%arg0: i32) -> (i32, i32, i32) {
    %c0_i32 = arith.constant 0 : i32
    %c0_i32_0 = arith.constant 0 : i32
    %c0_i32_1 = arith.constant 0 : i32
    return %arg0, %c0_i32, %c0_i32_0 : i32, i32, i32
  }
  func.func @transform_2(%arg0: i32) -> (i32, i32, i32, i32) {
    %c0_i32 = arith.constant 0 : i32
    %c0_i32_0 = arith.constant 0 : i32
    %c0_i32_1 = arith.constant 0 : i32
    %c0_i32_2 = arith.constant 0 : i32
    return %arg0, %c0_i32, %c0_i32_0, %c0_i32_1 : i32, i32, i32, i32
  }
  func.func @transform_3(%arg0: i32) -> (i32, i32, i32, i32) {
    %c0_i32 = arith.constant 0 : i32
    %c0_i32_0 = arith.constant 0 : i32
    %c0_i32_1 = arith.constant 0 : i32
    %c0_i32_2 = arith.constant 0 : i32
    return %arg0, %c0_i32, %c0_i32_0, %c0_i32_1 : i32, i32, i32, i32
  }
}

</mosaic_0001>

<bundles_post_ra>
// kernel: tpu_custom_call.1
= control target key start
LH: loop header
LB: loop body
LE: loop exit
PB: predicated region body
PF: predicated region fallthrough
CT: control target
= control target key end

     0   :  { %s1863_s0 = inlined_call_operand.hbm [shape: f32[2,16,8,128], index: 0, kind: input, shape index: {}]   ;;  %s1864_s1 = inlined_call_operand.hbm [shape: f32[2,128,128], index: 1, kind: input, shape index: {}]   ;;  %s1865_s2 = inlined_call_operand.hbm [shape: f32[2,16,8,128], index: 2, kind: output, shape index: {0}]   ;;  %s1866_s3 = inlined_call_operand.hbm [shape: f32[2,16,8,128], index: 3, kind: output, shape index: {1}]  }
   0x1   :  { %1867 = sst [smem:[#allocation14_spill]] %s1863_s0 }
   0x2   :  { %9 = vsyncpa [#allocation3], 0 }
   0x3   :  { %11 = vsyncpa [#allocation3 + $0x1], 0 }
   0x4   :  { %12 = vsyncpa [#allocation6], 0 }
   0x5   :  { %14 = vsyncpa [#allocation6 + $0x1], 0 }
   0x6   :  { %15 = vsyncpa [#allocation4], 0 }
   0x7   :  { %17 = vsyncpa [#allocation4 + $0x1], 0 }
   0x8   :  { %18 = vsyncpa [#allocation9], 0 }
   0x9   :  { %20 = vsyncpa [#allocation9 + $0x1], 0  ;;  %s1291_s12 = smov 0   ;;  %s1293_s13 = smov 0  }
   0xa   :  { %s1295_s14 = smov 0   ;;  %s1297_s15 = smov 0  }
   0xb LB: > { %s1312_s16 = sadd.s32 4294967295, %s1263_s15   ;;  %s940_s17 = sadd.s32 4294967294, %s1263_s15   ;;  %s1263_s15 = sphi %s1297_s15, %s1879_s15   ;;  %s1259_s14 = sphi %s1295_s14, %s1878_s14   ;;  %s1255_s13 = sphi %s1293_s13, %s1877_s13   ;;  %s1251_s12 = sphi %s1291_s12, %s1876_s12  }
   0xc   : > { %s1316_s18 = sadd.s32 1, %s1263_s15   ;;  %s33_s19 = sadd.s32 1, %s1259_s14 }
   0xd   : > { %s30_s20 = ssub.s32 %s1263_s15, %s1316_s18  ;;  %p40_p0 = scmp.ne.s32.totalorder %s1259_s14, %s1255_s13 }
   0xe   : > { %p31_p1 = scmp.eq.s32.totalorder %s30_s20, 0  ;;  %p41_p2 = scmp.eq.s32.totalorder %s1263_s15, 0 }
   0xf   : > { %p46_p3 = scmp.ne.s32.totalorder %s1255_s13, %s1251_s12  ;;  %p47_p4 = scmp.eq.s32.totalorder %s1312_s16, 0 }
  0x10   : > { %s1328_s21 = scalar_select %p31_p1, %s1259_s14, %s33_s19  }
  0x11   : > { %p1330_p5 = por %p41_p2, %p40_p0  ;;  %p1334_p6 = por %p47_p4, %p46_p3 }
  0x12   : > { %p96_p7 = scmp.eq.s32.totalorder %s1312_s16, 1  ;;  %p102_p8 = scmp.eq.s32.totalorder %s940_s17, 1 }
  0x13   : > { %p1061_p10 = scmp.lt.s32.totalorder %s1263_s15, 2  ;;  %s1350_s26 = sand.u32 1, %s1259_s14  }
  0x14   : > { %p1341_p11 = por %p96_p7, %p40_p0  ;;  %p1345_p12 = por %p102_p8, %p46_p3 }
  0x15   : > { %s1035_s27 = sshll.u32 %s1263_s15, 7  ;;  %s943_s28 = sshll.u32 %s1350_s26, 7 }
  0x16   : > { %s1872_s0 = sld [smem:[#allocation14_spill]]  ;;  %s152_s6 = scalar_lea.vmem [#allocation2], %s943_s28 }
  0x17   : > { %s160_s7 = sshll.u32 %s152_s6, 4  ;;  %p1363_p13 = pnand %p1061_p10, %p1330_p5  ;;  %s161_s7 = int_to_ptr.vmem [resolvable:$true] %s160_s7 }
  0x18   : > { %p949_p0 = scmp.ge.s32.totalorder %s1263_s15, 1  ;;  %p190_p1 = scmp.lt.s32.totalorder %s1263_s15, 3 }
  0x19   : > { %s149_s9 = scalar_lea.sflag [#allocation3], %s1350_s26  ;;  %p1105_p3 = pneg %p1363_p13 }
  0x1c   : > { %s157_s4 = scalar_lea.hbm %s1872_s0, %s1035_s27  ;;  %s1108_s20 = scalar_lea.hbm %s1872_s0, 256 }
  0x1d   : > { %s158_s5 = sshll.u32 %s157_s4, 4  ;;  %s159_s5 = int_to_ptr.hbm [resolvable:$true] %s158_s5 }
  0x1e   : > { %s1101_s10 = sshra.s32 %s159_s5, 4  ;;  %s1102_s10 = int_to_ptr.hbm [resolvable:$true] %s1101_s10 }
  0x1f   : > { %s1103_s11 = scalar_lea.hbm %s1102_s10, 128  ;;  %p1109_p5 = scmp.lt.s32.totalorder %s1102_s10, %s1872_s0 }
  0x20   : > { %p1104_p2 = scmp.ne.s32.totalorder %s1102_s10, %s1103_s11  ;;  %p1110_p8 = scmp.lt.s32.totalorder %s1108_s20, %s1103_s11 }
  0x22   : > { %p1106_p4 = pnand %p1105_p3, %p1104_p2  ;;  %p1111_p10 = por %p1110_p8, %p1109_p5 }
  0x24   : > { %p1107_p7 = pneg %p1106_p4 }
  0x26   : > { %p1112_p9 = pnand %p1111_p10, %p1107_p7 }
  0x28   : > { %1115 = shalt.err (!%p1112_p9)
}
  0x29   : > { %s1265_s30 = smov 128   ;;  %s1266_s4 = smov 8  }
  0x2a   : > { %1050 = dma.hbm_to_vmem [thread:$0]  (!%p1363_p13), %s159_s5, 2048, %s161_s7, %s149_s9, %s1265_s30, %s1265_s30, %s1266_s4  }
  0x2b   : > { %p1387_p2 = pnand %p949_p0, %p190_p1  ;;  %s179_s17 = scalar_lea.hbm %s1864_s1, %s1035_s27 }
  0x2c   : > { %s180_s19 = sshll.u32 %s179_s17, 4  ;;  %s174_s20 = scalar_lea.vmem [#allocation5], %s943_s28  ;;  %s181_s19 = int_to_ptr.hbm [resolvable:$true] %s180_s19 }
  0x2d   : > { %s182_s22 = sshll.u32 %s174_s20, 4  ;;  %s171_s29 = scalar_lea.sflag [#allocation6], %s1350_s26  ;;  %s183_s22 = int_to_ptr.vmem [resolvable:$true] %s182_s22 }
  0x2e   : > { %s1131_s0 = sshra.s32 %s181_s19, 4  ;;  %s1138_s10 = scalar_lea.hbm %s1864_s1, 256  ;;  %s1132_s0 = int_to_ptr.hbm [resolvable:$true] %s1131_s0 }
  0x2f   : > { %s1133_s5 = scalar_lea.hbm %s1132_s0, 128  ;;  %p1139_p4 = scmp.lt.s32.totalorder %s1132_s0, %s1864_s1 }
  0x30   : > { %p1134_p9 = scmp.ne.s32.totalorder %s1132_s0, %s1133_s5  ;;  %p1140_p7 = scmp.lt.s32.totalorder %s1138_s10, %s1133_s5 }
  0x32   : > { %p1136_p0 = pnand %p1134_p9, %p1105_p3  ;;  %p1141_p5 = por %p1140_p7, %p1139_p4 }
  0x34   : > { %p1137_p1 = pneg %p1136_p0 }
  0x36   : > { %p1142_p8 = pnand %p1141_p5, %p1137_p1 }
  0x38   : > { %1145 = shalt.err (!%p1142_p8)
}
  0x39   : > { %1053 = dma.hbm_to_vmem [thread:$0]  (!%p1363_p13), %s181_s19, 2048, %s183_s22, %s171_s29, %s1265_s30, %s1265_s30, %s1266_s4  }
  0x3a   : > { %194 = sbr.rel (%p1387_p2) target bundleno = 2147 (0x863), region = 28  ;;  %s1413_s26 = sand.u32 (!%p1387_p2), 1, %s1255_s13  }
  0x3b   : > { %s1416_s28 = sshll.u32 (!%p1387_p2), %s1413_s26, 7  ;;  %s197_s0 = scalar_lea.sflag (!%p1387_p2), [#allocation3], %s1413_s26 }
  0x3c   : > { %s1420_s17 = scalar_lea.vmem (!%p1387_p2), [#allocation2], %s1416_s28 }
  0x3f   : > { %1234 = dma.done.wait (%p1334_p6), %s197_s0, 2048  }
  0x40   : > { %1236 = vsyncadd (%p1334_p6), %s197_s0, 4294965248  ;;  %s207_s8 = scalar_lea.sflag [#allocation6], %s1413_s26  ;;  %s1428_s30 = scalar_lea.vmem [#allocation5], %s1416_s28 }
  0x41   : > { %1238 = dma.done.wait (%p1334_p6), %s207_s8, 2048  }
  0x42   : > { %1240 = vsyncadd (%p1334_p6), %s207_s8, 4294965248  ;;  %v1435_v0 = vld [vmem:[%s1428_s30 + $0x78] sm:$0xff]  ;;  %v1438_v1 = vld [vmem:[%s1428_s30 + $0x70] sm:$0xff]  ;;  %s1441_s4 = scalar_lea.vmem [#allocation8], %s1416_s28  ;;  %v1267_v2 = vmov 0.0   ;;  %s1552_s23 = scalar_lea.vmem [#allocation7], %s1416_s28 }
  0x43   : > { %261 = vst [vmem:[%s1441_s4] sm:$0xff] %v1267_v2  ;;  %264 = vmatpush.msra.mxu0 %v1435_v0  ;;  %300 = vmatpush.msra.mxu1 %v1435_v0  ;;  %v1448_v3 = vld [vmem:[%s1428_s30 + $0x68] sm:$0xff]  ;;  %v1455_v4 = vld [vmem:[%s1428_s30 + $0x60] sm:$0xff]  ;;  %v1462_v5 = vld [vmem:[%s1428_s30 + $0x58] sm:$0xff]  ;;  %v1268_v22 = vmov 1.0   ;;  %s1037_s6 = sshll.u32 %s1312_s16, 7  ;;  %s791_s9 = sshll.u32 %s1552_s23, 4  ;;  %s1814_s9 = int_to_ptr.vmem [resolvable:$true] %s791_s9 }
  0x44   : > { %334 = vmatpush.msra.mxu2 %v1435_v0  ;;  %368 = vmatpush.msra.mxu3 %v1435_v0  ;;  %v1469_v6 = vld [vmem:[%s1428_s30 + $0x50] sm:$0xff]  ;;  %v1476_v7 = vld [vmem:[%s1428_s30 + $0x48] sm:$0xff]  ;;  %v1483_v8 = vld [vmem:[%s1428_s30 + $0x40] sm:$0xff]  ;;  %260 = vst [vmem:[%s1552_s23] sm:$0xff] %v1267_v2  ;;  %s807_s22 = scalar_lea.hbm %s1866_s3, %s1037_s6  ;;  %s790_s7 = scalar_lea.hbm %s1865_s2, %s1037_s6 }
  0x45   : > { %265 = vmatpush.msra.mxu0 %v1438_v1  ;;  %301 = vmatpush.msra.mxu1 %v1438_v1  ;;  %v1490_v9 = vld [vmem:[%s1428_s30 + $0x38] sm:$0xff]  ;;  %v1497_v10 = vld [vmem:[%s1428_s30 + $0x30] sm:$0xff]  ;;  %v1504_v11 = vld [vmem:[%s1428_s30 + $0x28] sm:$0xff]  ;;  %s808_s10 = sshll.u32 %s1441_s4, 4  ;;  %s810_s27 = sshll.u32 %s807_s22, 4  ;;  %s809_s10 = int_to_ptr.vmem [resolvable:$true] %s808_s10  ;;  %s811_s27 = int_to_ptr.hbm [resolvable:$true] %s810_s27 }
  0x46   : > { %335 = vmatpush.msra.mxu2 %v1438_v1  ;;  %369 = vmatpush.msra.mxu3 %v1438_v1  ;;  %v1511_v12 = vld [vmem:[%s1428_s30 + $0x20] sm:$0xff]  ;;  %v1518_v13 = vld [vmem:[%s1428_s30 + $0x18] sm:$0xff]  ;;  %v1525_v14 = vld [vmem:[%s1428_s30 + $0x10] sm:$0xff]  ;;  %s793_s16 = sshll.u32 %s790_s7, 4  ;;  %s779_s11 = scalar_lea.sflag [#allocation9], %s1413_s26  ;;  %s1816_s16 = int_to_ptr.hbm [resolvable:$true] %s793_s16 }
  0x47   : > { %266 = vmatpush.msra.mxu0 %v1448_v3  ;;  %302 = vmatpush.msra.mxu1 %v1448_v3  ;;  %v1532_v15 = vld [vmem:[%s1428_s30 + $0x8] sm:$0xff]  ;;  %v1539_v16 = vld [vmem:[%s1428_s30] sm:$0xff]  ;;  %v962_v31 = vld [vmem:[%s1420_s17 + $0x10] sm:$0xff]  ;;  %s1175_s28 = sshra.s32 %s811_s27, 4  ;;  %s1181_s30 = scalar_lea.hbm %s1866_s3, 256  ;;  %s1176_s28 = int_to_ptr.hbm [resolvable:$true] %s1175_s28 }
  0x48   : > { %336 = vmatpush.msra.mxu2 %v1448_v3  ;;  %370 = vmatpush.msra.mxu3 %v1448_v3  ;;  %v262_v17 = vld [vmem:[%s1420_s17] sm:$0xff]  ;;  %v957_v23 = vld [vmem:[%s1420_s17 + $0x8] sm:$0xff]  ;;  %v333_v32 = vadd.f32 0.25, %v962_v31  ;;  %v967_v39 = vld [vmem:[%s1420_s17 + $0x18] sm:$0xff]  ;;  %s1177_s0 = scalar_lea.hbm %s1176_s28, 128  ;;  %p1182_p10 = scmp.lt.s32.totalorder %s1176_s28, %s1866_s3 }
  0x49   : > { %267 = vmatpush.msra.mxu0 %v1455_v4  ;;  %303 = vmatpush.msra.mxu1 %v1455_v4  ;;  %v263_v18 = vadd.f32 0.25, %v262_v17  ;;  %v299_v24 = vadd.f32 0.25, %v957_v23  ;;  %v367_v40 = vadd.f32 0.25, %v967_v39  ;;  %v972_v47 = vld [vmem:[%s1420_s17 + $0x20] sm:$0xff]  ;;  %v977_v55 = vld [vmem:[%s1420_s17 + $0x28] sm:$0xff]  ;;  %v982_v63 = vld [vmem:[%s1420_s17 + $0x30] sm:$0xff]  ;;  %p1178_p6 = scmp.ne.s32.totalorder %s1176_s28, %s1177_s0  ;;  %p1183_p2 = scmp.lt.s32.totalorder %s1181_s30, %s1177_s0 }
  0x4a   : > { %337 = vmatpush.msra.mxu2 %v1455_v4  ;;  %371 = vmatpush.msra.mxu3 %v1455_v4  ;;  %v401_v48 = vadd.f32 0.25, %v972_v47  ;;  %v435_v56 = vadd.f32 0.25, %v977_v55 }
  0x4b   : > { %268 = vmatpush.msra.mxu0 %v1462_v5  ;;  %304 = vmatpush.msra.mxu1 %v1462_v5  ;;  %p1179_p13 = pnand %p1178_p6, %p1341_p11  ;;  %p1184_p9 = por %p1183_p2, %p1182_p10 }
  0x4c   : > { %338 = vmatpush.msra.mxu2 %v1462_v5  ;;  %372 = vmatpush.msra.mxu3 %v1462_v5 }
  0x4d   : > { %269 = vmatpush.msra.mxu0 %v1469_v6  ;;  %305 = vmatpush.msra.mxu1 %v1469_v6  ;;  %p1180_p3 = pneg %p1179_p13 }
  0x4e   : > { %339 = vmatpush.msra.mxu2 %v1469_v6  ;;  %373 = vmatpush.msra.mxu3 %v1469_v6 }
  0x4f   : > { %270 = vmatpush.msra.mxu0 %v1476_v7  ;;  %306 = vmatpush.msra.mxu1 %v1476_v7  ;;  %p1185_p0 = pnand %p1184_p9, %p1180_p3 }
  0x50   : > { %340 = vmatpush.msra.mxu2 %v1476_v7  ;;  %374 = vmatpush.msra.mxu3 %v1476_v7 }
  0x51   : > { %271 = vmatpush.msra.mxu0 %v1483_v8  ;;  %307 = vmatpush.msra.mxu1 %v1483_v8 }
  0x52   : > { %341 = vmatpush.msra.mxu2 %v1483_v8  ;;  %375 = vmatpush.msra.mxu3 %v1483_v8 }
  0x53   : > { %272 = vmatpush.msra.mxu0 %v1490_v9  ;;  %308 = vmatpush.msra.mxu1 %v1490_v9 }
  0x54   : > { %342 = vmatpush.msra.mxu2 %v1490_v9  ;;  %376 = vmatpush.msra.mxu3 %v1490_v9 }
  0x55   : > { %273 = vmatpush.msra.mxu0 %v1497_v10  ;;  %309 = vmatpush.msra.mxu1 %v1497_v10 }
  0x56   : > { %343 = vmatpush.msra.mxu2 %v1497_v10  ;;  %377 = vmatpush.msra.mxu3 %v1497_v10 }
  0x57   : > { %274 = vmatpush.msra.mxu0 %v1504_v11  ;;  %310 = vmatpush.msra.mxu1 %v1504_v11 }
  0x58   : > { %344 = vmatpush.msra.mxu2 %v1504_v11  ;;  %378 = vmatpush.msra.mxu3 %v1504_v11 }
  0x59   : > { %275 = vmatpush.msra.mxu0 %v1511_v12  ;;  %311 = vmatpush.msra.mxu1 %v1511_v12 }
  0x5a   : > { %345 = vmatpush.msra.mxu2 %v1511_v12  ;;  %379 = vmatpush.msra.mxu3 %v1511_v12 }
  0x5b   : > { %276 = vmatpush.msra.mxu0 %v1518_v13  ;;  %312 = vmatpush.msra.mxu1 %v1518_v13 }
  0x5c   : > { %346 = vmatpush.msra.mxu2 %v1518_v13  ;;  %380 = vmatpush.msra.mxu3 %v1518_v13 }
  0x5d   : > { %277 = vmatpush.msra.mxu0 %v1525_v14  ;;  %313 = vmatpush.msra.mxu1 %v1525_v14 }
  0x5e   : > { %347 = vmatpush.msra.mxu2 %v1525_v14  ;;  %381 = vmatpush.msra.mxu3 %v1525_v14 }
  0x5f   : > { %278 = vmatpush.msra.mxu0 %v1532_v15  ;;  %314 = vmatpush.msra.mxu1 %v1532_v15 }
  0x60   : > { %348 = vmatpush.msra.mxu2 %v1532_v15  ;;  %382 = vmatpush.msra.mxu3 %v1532_v15 }
  0x61   : > { %279 = vmatpush.msra.mxu0 %v1539_v16  ;;  %315 = vmatpush.msra.mxu1 %v1539_v16 }
  0x62   : > { %280 = vmatmul.f32.vlgmr.msra.gmra.mxu0 %v1267_v2  ;;  %349 = vmatpush.msra.mxu2 %v1539_v16 }
  0x63   : > { %383 = vmatpush.msra.mxu3 %v1539_v16  ;;  %402 = vmatpush.msrb.mxu0 %v1435_v0 }
  0x64   : > { %436 = vmatpush.msrb.mxu1 %v1435_v0  ;;  %470 = vmatpush.msrb.mxu2 %v1435_v0 }
  0x65   : > { %403 = vmatpush.msrb.mxu0 %v1438_v1  ;;  %504 = vmatpush.msrb.mxu3 %v1435_v0 }
  0x66   : > { %437 = vmatpush.msrb.mxu1 %v1438_v1  ;;  %471 = vmatpush.msrb.mxu2 %v1438_v1 }
  0x67   : > { %404 = vmatpush.msrb.mxu0 %v1448_v3  ;;  %505 = vmatpush.msrb.mxu3 %v1438_v1 }
  0x68   : > { %438 = vmatpush.msrb.mxu1 %v1448_v3  ;;  %472 = vmatpush.msrb.mxu2 %v1448_v3 }
  0x69   : > { %405 = vmatpush.msrb.mxu0 %v1455_v4  ;;  %506 = vmatpush.msrb.mxu3 %v1448_v3 }
  0x6a   : > { %439 = vmatpush.msrb.mxu1 %v1455_v4  ;;  %473 = vmatpush.msrb.mxu2 %v1455_v4 }
  0x6b   : > { %406 = vmatpush.msrb.mxu0 %v1462_v5  ;;  %507 = vmatpush.msrb.mxu3 %v1455_v4 }
  0x6c   : > { %440 = vmatpush.msrb.mxu1 %v1462_v5  ;;  %474 = vmatpush.msrb.mxu2 %v1462_v5 }
  0x6d   : > { %407 = vmatpush.msrb.mxu0 %v1469_v6  ;;  %508 = vmatpush.msrb.mxu3 %v1462_v5 }
  0x6e   : > { %441 = vmatpush.msrb.mxu1 %v1469_v6  ;;  %475 = vmatpush.msrb.mxu2 %v1469_v6 }
  0x6f   : > { %408 = vmatpush.msrb.mxu0 %v1476_v7  ;;  %509 = vmatpush.msrb.mxu3 %v1469_v6 }
  0x70   : > { %442 = vmatpush.msrb.mxu1 %v1476_v7  ;;  %476 = vmatpush.msrb.mxu2 %v1476_v7 }
  0x71   : > { %409 = vmatpush.msrb.mxu0 %v1483_v8  ;;  %510 = vmatpush.msrb.mxu3 %v1476_v7 }
  0x72   : > { %443 = vmatpush.msrb.mxu1 %v1483_v8  ;;  %477 = vmatpush.msrb.mxu2 %v1483_v8 }
  0x73   : > { %410 = vmatpush.msrb.mxu0 %v1490_v9  ;;  %511 = vmatpush.msrb.mxu3 %v1483_v8 }
  0x74   : > { %444 = vmatpush.msrb.mxu1 %v1490_v9  ;;  %478 = vmatpush.msrb.mxu2 %v1490_v9 }
  0x75   : > { %411 = vmatpush.msrb.mxu0 %v1497_v10  ;;  %512 = vmatpush.msrb.mxu3 %v1490_v9 }
  0x76   : > { %445 = vmatpush.msrb.mxu1 %v1497_v10  ;;  %479 = vmatpush.msrb.mxu2 %v1497_v10 }
  0x77   : > { %412 = vmatpush.msrb.mxu0 %v1504_v11  ;;  %513 = vmatpush.msrb.mxu3 %v1497_v10 }
  0x78   : > { %446 = vmatpush.msrb.mxu1 %v1504_v11  ;;  %480 = vmatpush.msrb.mxu2 %v1504_v11 }
  0x79   : > { %413 = vmatpush.msrb.mxu0 %v1511_v12  ;;  %514 = vmatpush.msrb.mxu3 %v1504_v11 }
  0x7a   : > { %447 = vmatpush.msrb.mxu1 %v1511_v12  ;;  %481 = vmatpush.msrb.mxu2 %v1511_v12 }
  0x7b   : > { %414 = vmatpush.msrb.mxu0 %v1518_v13  ;;  %515 = vmatpush.msrb.mxu3 %v1511_v12 }
  0x7c   : > { %448 = vmatpush.msrb.mxu1 %v1518_v13  ;;  %482 = vmatpush.msrb.mxu2 %v1518_v13 }
  0x7d   : > { %415 = vmatpush.msrb.mxu0 %v1525_v14  ;;  %516 = vmatpush.msrb.mxu3 %v1518_v13 }
  0x7e   : > { %449 = vmatpush.msrb.mxu1 %v1525_v14  ;;  %483 = vmatpush.msrb.mxu2 %v1525_v14 }
  0x7f   : > { %416 = vmatpush.msrb.mxu0 %v1532_v15  ;;  %517 = vmatpush.msrb.mxu3 %v1525_v14 }
  0x80   : > { %450 = vmatpush.msrb.mxu1 %v1532_v15  ;;  %484 = vmatpush.msrb.mxu2 %v1532_v15 }
  0x81   : > { %417 = vmatpush.msrb.mxu0 %v1539_v16  ;;  %518 = vmatpush.msrb.mxu3 %v1532_v15 }
  0x82   : > { %451 = vmatpush.msrb.mxu1 %v1539_v16  ;;  %485 = vmatpush.msrb.mxu2 %v1539_v16 }
  0x83   : > { %519 = vmatpush.msrb.mxu3 %v1539_v16  ;;  %538 = vmatpush.msra.mxu0 %v1435_v0 }
  0x85   : > { %539 = vmatpush.msra.mxu0 %v1438_v1 }
  0x87   : > { %540 = vmatpush.msra.mxu0 %v1448_v3 }
  0x89   : > { %541 = vmatpush.msra.mxu0 %v1455_v4 }
  0x8b   : > { %542 = vmatpush.msra.mxu0 %v1462_v5 }
  0x8d   : > { %543 = vmatpush.msra.mxu0 %v1469_v6 }
  0x8f   : > { %544 = vmatpush.msra.mxu0 %v1476_v7 }
  0x91   : > { %545 = vmatpush.msra.mxu0 %v1483_v8 }
  0x93   : > { %546 = vmatpush.msra.mxu0 %v1490_v9 }
  0x95   : > { %547 = vmatpush.msra.mxu0 %v1497_v10 }
  0x97   : > { %548 = vmatpush.msra.mxu0 %v1504_v11 }
  0x99   : > { %549 = vmatpush.msra.mxu0 %v1511_v12 }
  0x9b   : > { %550 = vmatpush.msra.mxu0 %v1518_v13 }
  0x9d   : > { %551 = vmatpush.msra.mxu0 %v1525_v14 }
  0x9f   : > { %552 = vmatpush.msra.mxu0 %v1532_v15 }
  0xa1   : > { %553 = vmatpush.msra.mxu0 %v1539_v16 }
  0xdf   : > { %v281_v19 = vpop.f32.mrf.mxu0 }
  0xe0   : > { %v284_v20 = vadd.f32 %v281_v19, %v263_v18 }
  0xe2   : > { %956 = vst [vmem:[%s1441_s4 + $0x8] sm:$0xff] %v284_v20  ;;  %vm290_vm0 = vcmp.gt.f32.partialorder %v284_v20, 1.0  ;;  %v321_v27 = vmul.f32 0.5, %v284_v20 }
  0xe3   : > { %v954_v21 = vsel %vm290_vm0, 1.0, %v1267_v2  ;;  %958 = vmatmul.msk.f32.vlgmr.msra.gmra.mxu1 %vm290_vm0, %v1268_v22 }
  0xe4   : > { %955 = vst [vmem:[%s1552_s23 + $0x8] sm:$0xff] %v954_v21  ;;  %572 = vmatpush.msra.mxu1 %v1435_v0 }
  0xe6   : > { %573 = vmatpush.msra.mxu1 %v1438_v1 }
  0xe8   : > { %574 = vmatpush.msra.mxu1 %v1448_v3 }
  0xea   : > { %575 = vmatpush.msra.mxu1 %v1455_v4 }
  0xec   : > { %576 = vmatpush.msra.mxu1 %v1462_v5 }
  0xee   : > { %577 = vmatpush.msra.mxu1 %v1469_v6 }
  0xf0   : > { %578 = vmatpush.msra.mxu1 %v1476_v7 }
  0xf2   : > { %579 = vmatpush.msra.mxu1 %v1483_v8 }
  0xf4   : > { %580 = vmatpush.msra.mxu1 %v1490_v9 }
  0xf6   : > { %581 = vmatpush.msra.mxu1 %v1497_v10 }
  0xf8   : > { %582 = vmatpush.msra.mxu1 %v1504_v11 }
  0xfa   : > { %583 = vmatpush.msra.mxu1 %v1511_v12 }
  0xfc   : > { %584 = vmatpush.msra.mxu1 %v1518_v13 }
  0xfe   : > { %585 = vmatpush.msra.mxu1 %v1525_v14 }
 0x100   : > { %586 = vmatpush.msra.mxu1 %v1532_v15 }
 0x102   : > { %587 = vmatpush.msra.mxu1 %v1539_v16 }
 0x160   : > { %v317_v25 = vpop.f32.mrf.mxu1 }
 0x161   : > { %v320_v26 = vadd.f32 %v317_v25, %v299_v24  ;;  %v997_v25 = vld [vmem:[%s1420_s17 + $0x48] sm:$0xff] }
 0x163   : > { %v322_v28 = vadd.f32 %v321_v27, %v320_v26  ;;  %v571_v26 = vadd.f32 0.25, %v997_v25 }
 0x165   : > { %v323_v29 = vsub.f32 %v322_v28, %v954_v21 }
 0x167   : > { %961 = vst [vmem:[%s1441_s4 + $0x10] sm:$0xff] %v323_v29  ;;  %vm324_vm1 = vcmp.gt.f32.partialorder %v323_v29, 1.0  ;;  %v355_v35 = vmul.f32 0.5, %v323_v29 }
 0x168   : > { %v959_v30 = vsel %vm324_vm1, 1.0, %v1267_v2  ;;  %963 = vmatmul.msk.f32.vlgmr.msra.gmra.mxu2 %vm324_vm1, %v1268_v22 }
 0x169   : > { %960 = vst [vmem:[%s1552_s23 + $0x10] sm:$0xff] %v959_v30  ;;  %606 = vmatpush.msra.mxu2 %v1435_v0 }
 0x16b   : > { %607 = vmatpush.msra.mxu2 %v1438_v1 }
 0x16d   : > { %608 = vmatpush.msra.mxu2 %v1448_v3 }
 0x16f   : > { %609 = vmatpush.msra.mxu2 %v1455_v4 }
 0x171   : > { %610 = vmatpush.msra.mxu2 %v1462_v5 }
 0x173   : > { %611 = vmatpush.msra.mxu2 %v1469_v6 }
 0x175   : > { %612 = vmatpush.msra.mxu2 %v1476_v7 }
 0x177   : > { %613 = vmatpush.msra.mxu2 %v1483_v8 }
 0x179   : > { %614 = vmatpush.msra.mxu2 %v1490_v9 }
 0x17b   : > { %615 = vmatpush.msra.mxu2 %v1497_v10 }
 0x17d   : > { %616 = vmatpush.msra.mxu2 %v1504_v11 }
 0x17f   : > { %617 = vmatpush.msra.mxu2 %v1511_v12 }
 0x181   : > { %618 = vmatpush.msra.mxu2 %v1518_v13 }
 0x183   : > { %619 = vmatpush.msra.mxu2 %v1525_v14 }
 0x185   : > { %620 = vmatpush.msra.mxu2 %v1532_v15 }
 0x187   : > { %621 = vmatpush.msra.mxu2 %v1539_v16 }
 0x1eb   : > { %v351_v33 = vpop.f32.mrf.mxu2 }
 0x1ec   : > { %v354_v34 = vadd.f32 %v351_v33, %v333_v32  ;;  %v1002_v33 = vld [vmem:[%s1420_s17 + $0x50] sm:$0xff] }
 0x1ee   : > { %v356_v36 = vadd.f32 %v355_v35, %v354_v34  ;;  %v605_v34 = vadd.f32 0.25, %v1002_v33 }
 0x1f0   : > { %v357_v37 = vsub.f32 %v356_v36, %v959_v30 }
 0x1f2   : > { %966 = vst [vmem:[%s1441_s4 + $0x18] sm:$0xff] %v357_v37  ;;  %vm358_vm2 = vcmp.gt.f32.partialorder %v357_v37, 1.0  ;;  %v389_v43 = vmul.f32 0.5, %v357_v37 }
 0x1f3   : > { %v964_v38 = vsel %vm358_vm2, 1.0, %v1267_v2  ;;  %968 = vmatmul.msk.f32.vlgmr.msra.gmra.mxu3 %vm358_vm2, %v1268_v22 }
 0x1f4   : > { %965 = vst [vmem:[%s1552_s23 + $0x18] sm:$0xff] %v964_v38  ;;  %640 = vmatpush.msra.mxu3 %v1435_v0 }
 0x1f6   : > { %641 = vmatpush.msra.mxu3 %v1438_v1 }
 0x1f8   : > { %642 = vmatpush.msra.mxu3 %v1448_v3 }
 0x1fa   : > { %643 = vmatpush.msra.mxu3 %v1455_v4 }
 0x1fc   : > { %644 = vmatpush.msra.mxu3 %v1462_v5 }
 0x1fe   : > { %645 = vmatpush.msra.mxu3 %v1469_v6 }
 0x200   : > { %646 = vmatpush.msra.mxu3 %v1476_v7 }
 0x202   : > { %647 = vmatpush.msra.mxu3 %v1483_v8 }
 0x204   : > { %648 = vmatpush.msra.mxu3 %v1490_v9 }
 0x206   : > { %649 = vmatpush.msra.mxu3 %v1497_v10 }
 0x208   : > { %650 = vmatpush.msra.mxu3 %v1504_v11 }
 0x20a   : > { %651 = vmatpush.msra.mxu3 %v1511_v12 }
 0x20c   : > { %652 = vmatpush.msra.mxu3 %v1518_v13 }
 0x20e   : > { %653 = vmatpush.msra.mxu3 %v1525_v14 }
 0x210   : > { %654 = vmatpush.msra.mxu3 %v1532_v15 }
 0x212   : > { %655 = vmatpush.msra.mxu3 %v1539_v16 }
 0x276   : > { %v385_v41 = vpop.f32.mrf.mxu3 }
 0x277   : > { %v388_v42 = vadd.f32 %v385_v41, %v367_v40  ;;  %v1007_v41 = vld [vmem:[%s1420_s17 + $0x58] sm:$0xff] }
 0x279   : > { %v390_v44 = vadd.f32 %v389_v43, %v388_v42  ;;  %v639_v42 = vadd.f32 0.25, %v1007_v41 }
 0x27b   : > { %v391_v45 = vsub.f32 %v390_v44, %v964_v38 }
 0x27d   : > { %971 = vst [vmem:[%s1441_s4 + $0x20] sm:$0xff] %v391_v45  ;;  %vm392_vm3 = vcmp.gt.f32.partialorder %v391_v45, 1.0  ;;  %v423_v51 = vmul.f32 0.5, %v391_v45 }
 0x27e   : > { %v969_v46 = vsel %vm392_vm3, 1.0, %v1267_v2  ;;  %973 = vmatmul.msk.f32.vlgmr.msrb.gmra.mxu0 %vm392_vm3, %v1268_v22 }
 0x27f   : > { %970 = vst [vmem:[%s1552_s23 + $0x20] sm:$0xff] %v969_v46  ;;  %674 = vmatpush.msrb.mxu0 %v1435_v0 }
 0x281   : > { %675 = vmatpush.msrb.mxu0 %v1438_v1 }
 0x283   : > { %676 = vmatpush.msrb.mxu0 %v1448_v3 }
 0x285   : > { %677 = vmatpush.msrb.mxu0 %v1455_v4 }
 0x287   : > { %678 = vmatpush.msrb.mxu0 %v1462_v5 }
 0x289   : > { %679 = vmatpush.msrb.mxu0 %v1469_v6 }
 0x28b   : > { %680 = vmatpush.msrb.mxu0 %v1476_v7 }
 0x28d   : > { %681 = vmatpush.msrb.mxu0 %v1483_v8 }
 0x28f   : > { %682 = vmatpush.msrb.mxu0 %v1490_v9 }
 0x291   : > { %683 = vmatpush.msrb.mxu0 %v1497_v10 }
 0x293   : > { %684 = vmatpush.msrb.mxu0 %v1504_v11 }
 0x295   : > { %685 = vmatpush.msrb.mxu0 %v1511_v12 }
 0x297   : > { %686 = vmatpush.msrb.mxu0 %v1518_v13 }
 0x299   : > { %687 = vmatpush.msrb.mxu0 %v1525_v14 }
 0x29b   : > { %688 = vmatpush.msrb.mxu0 %v1532_v15 }
 0x29d   : > { %689 = vmatpush.msrb.mxu0 %v1539_v16 }
 0x2fb   : > { %v419_v49 = vpop.f32.mrf.mxu0 }
 0x2fc   : > { %v422_v50 = vadd.f32 %v419_v49, %v401_v48  ;;  %v1012_v49 = vld [vmem:[%s1420_s17 + $0x60] sm:$0xff] }
 0x2fe   : > { %v424_v52 = vadd.f32 %v423_v51, %v422_v50  ;;  %v673_v50 = vadd.f32 0.25, %v1012_v49 }
 0x300   : > { %v425_v53 = vsub.f32 %v424_v52, %v969_v46 }
 0x302   : > { %976 = vst [vmem:[%s1441_s4 + $0x28] sm:$0xff] %v425_v53  ;;  %vm426_vm4 = vcmp.gt.f32.partialorder %v425_v53, 1.0  ;;  %v457_v59 = vmul.f32 0.5, %v425_v53 }
 0x303   : > { %v974_v54 = vsel %vm426_vm4, 1.0, %v1267_v2  ;;  %978 = vmatmul.msk.f32.vlgmr.msrb.gmra.mxu1 %vm426_vm4, %v1268_v22 }
 0x304   : > { %975 = vst [vmem:[%s1552_s23 + $0x28] sm:$0xff] %v974_v54  ;;  %708 = vmatpush.msrb.mxu1 %v1435_v0 }
 0x306   : > { %709 = vmatpush.msrb.mxu1 %v1438_v1 }
 0x308   : > { %710 = vmatpush.msrb.mxu1 %v1448_v3 }
 0x30a   : > { %711 = vmatpush.msrb.mxu1 %v1455_v4 }
 0x30c   : > { %712 = vmatpush.msrb.mxu1 %v1462_v5 }
 0x30e   : > { %713 = vmatpush.msrb.mxu1 %v1469_v6 }
 0x310   : > { %714 = vmatpush.msrb.mxu1 %v1476_v7 }
 0x312   : > { %715 = vmatpush.msrb.mxu1 %v1483_v8 }
 0x314   : > { %716 = vmatpush.msrb.mxu1 %v1490_v9 }
 0x316   : > { %717 = vmatpush.msrb.mxu1 %v1497_v10 }
 0x318   : > { %718 = vmatpush.msrb.mxu1 %v1504_v11 }
 0x31a   : > { %719 = vmatpush.msrb.mxu1 %v1511_v12 }
 0x31c   : > { %720 = vmatpush.msrb.mxu1 %v1518_v13 }
 0x31e   : > { %721 = vmatpush.msrb.mxu1 %v1525_v14 }
 0x320   : > { %722 = vmatpush.msrb.mxu1 %v1532_v15 }
 0x322   : > { %723 = vmatpush.msrb.mxu1 %v1539_v16 }
 0x380   : > { %v453_v57 = vpop.f32.mrf.mxu1 }
 0x381   : > { %v456_v58 = vadd.f32 %v453_v57, %v435_v56  ;;  %v1017_v57 = vld [vmem:[%s1420_s17 + $0x68] sm:$0xff] }
 0x383   : > { %v458_v60 = vadd.f32 %v457_v59, %v456_v58  ;;  %v707_v58 = vadd.f32 0.25, %v1017_v57 }
 0x385   : > { %v459_v61 = vsub.f32 %v458_v60, %v974_v54 }
 0x387   : > { %981 = vst [vmem:[%s1441_s4 + $0x30] sm:$0xff] %v459_v61  ;;  %vm460_vm5 = vcmp.gt.f32.partialorder %v459_v61, 1.0 }
 0x388   : > { %v979_v62 = vsel %vm460_vm5, 1.0, %v1267_v2  ;;  %983 = vmatmul.msk.f32.vlgmr.msrb.gmra.mxu2 %vm460_vm5, %v1268_v22 }
 0x389   : > { %980 = vst [vmem:[%s1552_s23 + $0x30] sm:$0xff] %v979_v62  ;;  %742 = vmatpush.msrb.mxu2 %v1435_v0  ;;  %v469_v0 = vadd.f32 0.25, %v982_v63 }
 0x38b   : > { %743 = vmatpush.msrb.mxu2 %v1438_v1 }
 0x38d   : > { %744 = vmatpush.msrb.mxu2 %v1448_v3 }
 0x38f   : > { %745 = vmatpush.msrb.mxu2 %v1455_v4  ;;  %v491_v4 = vmul.f32 0.5, %v459_v61 }
 0x391   : > { %746 = vmatpush.msrb.mxu2 %v1462_v5 }
 0x393   : > { %747 = vmatpush.msrb.mxu2 %v1469_v6 }
 0x395   : > { %748 = vmatpush.msrb.mxu2 %v1476_v7 }
 0x397   : > { %749 = vmatpush.msrb.mxu2 %v1483_v8  ;;  %v987_v8 = vld [vmem:[%s1420_s17 + $0x38] sm:$0xff] }
 0x399   : > { %750 = vmatpush.msrb.mxu2 %v1490_v9  ;;  %v503_v9 = vadd.f32 0.25, %v987_v8 }
 0x39b   : > { %751 = vmatpush.msrb.mxu2 %v1497_v10 }
 0x39d   : > { %752 = vmatpush.msrb.mxu2 %v1504_v11 }
 0x39f   : > { %753 = vmatpush.msrb.mxu2 %v1511_v12 }
 0x3a1   : > { %754 = vmatpush.msrb.mxu2 %v1518_v13 }
 0x3a3   : > { %755 = vmatpush.msrb.mxu2 %v1525_v14 }
 0x3a5   : > { %756 = vmatpush.msrb.mxu2 %v1532_v15 }
 0x3a7   : > { %757 = vmatpush.msrb.mxu2 %v1539_v16  ;;  %v992_v16 = vld [vmem:[%s1420_s17 + $0x40] sm:$0xff] }
 0x3a8   : > { %v537_v17 = vadd.f32 0.25, %v992_v16 }
 0x40b   : > { %v487_v1 = vpop.f32.mrf.mxu2 }
 0x40c   : > { %v490_v3 = vadd.f32 %v487_v1, %v469_v0  ;;  %v1022_v1 = vld [vmem:[%s1420_s17 + $0x70] sm:$0xff] }
 0x40e   : > { %v492_v5 = vadd.f32 %v491_v4, %v490_v3  ;;  %v741_v3 = vadd.f32 0.25, %v1022_v1 }
 0x410   : > { %v493_v6 = vsub.f32 %v492_v5, %v979_v62 }
 0x412   : > { %986 = vst [vmem:[%s1441_s4 + $0x38] sm:$0xff] %v493_v6  ;;  %vm494_vm6 = vcmp.gt.f32.partialorder %v493_v6, 1.0  ;;  %v525_v12 = vmul.f32 0.5, %v493_v6 }
 0x413   : > { %v984_v7 = vsel %vm494_vm6, 1.0, %v1267_v2  ;;  %988 = vmatmul.msk.f32.vlgmr.msrb.gmra.mxu3 %vm494_vm6, %v1268_v22 }
 0x414   : > { %985 = vst [vmem:[%s1552_s23 + $0x38] sm:$0xff] %v984_v7 }
 0x496   : > { %v521_v10 = vpop.f32.mrf.mxu3 }
 0x497   : > { %v524_v11 = vadd.f32 %v521_v10, %v503_v9 }
 0x499   : > { %v526_v13 = vadd.f32 %v525_v12, %v524_v11 }
 0x49b   : > { %v527_v14 = vsub.f32 %v526_v13, %v984_v7 }
 0x49d   : > { %991 = vst [vmem:[%s1441_s4 + $0x40] sm:$0xff] %v527_v14  ;;  %vm528_vm7 = vcmp.gt.f32.partialorder %v527_v14, 1.0  ;;  %v559_v20 = vmul.f32 0.5, %v527_v14 }
 0x49e   : > { %993 = vmatmul.msk.f32.vlgmr.msra.gmra.mxu0 %vm528_vm7, %v1268_v22  ;;  %v989_v15 = vsel %vm528_vm7, 1.0, %v1267_v2 }
 0x49f   : > { %990 = vst [vmem:[%s1552_s23 + $0x40] sm:$0xff] %v989_v15 }
 0x51b   : > { %v555_v18 = vpop.f32.mrf.mxu0 }
 0x51c   : > { %v558_v19 = vadd.f32 %v555_v18, %v537_v17 }
 0x51e   : > { %v560_v21 = vadd.f32 %v559_v20, %v558_v19 }
 0x520   : > { %v561_v23 = vsub.f32 %v560_v21, %v989_v15 }
 0x522   : > { %996 = vst [vmem:[%s1441_s4 + $0x48] sm:$0xff] %v561_v23  ;;  %vm562_vm8 = vcmp.gt.f32.partialorder %v561_v23, 1.0  ;;  %v593_v29 = vmul.f32 0.5, %v561_v23 }
 0x523   : > { %998 = vmatmul.msk.f32.vlgmr.msra.gmra.mxu1 %vm562_vm8, %v1268_v22  ;;  %v994_v24 = vsel %vm562_vm8, 1.0, %v1267_v2 }
 0x524   : > { %995 = vst [vmem:[%s1552_s23 + $0x48] sm:$0xff] %v994_v24 }
 0x5a0   : > { %v589_v27 = vpop.f32.mrf.mxu1 }
 0x5a1   : > { %v592_v28 = vadd.f32 %v589_v27, %v571_v26 }
 0x5a3   : > { %v594_v30 = vadd.f32 %v593_v29, %v592_v28 }
 0x5a5   : > { %v595_v31 = vsub.f32 %v594_v30, %v994_v24 }
 0x5a7   : > { %1001 = vst [vmem:[%s1441_s4 + $0x50] sm:$0xff] %v595_v31  ;;  %vm596_vm9 = vcmp.gt.f32.partialorder %v595_v31, 1.0  ;;  %v627_v37 = vmul.f32 0.5, %v595_v31 }
 0x5a8   : > { %1003 = vmatmul.msk.f32.vlgmr.msra.gmra.mxu2 %vm596_vm9, %v1268_v22  ;;  %v999_v32 = vsel %vm596_vm9, 1.0, %v1267_v2 }
 0x5a9   : > { %1000 = vst [vmem:[%s1552_s23 + $0x50] sm:$0xff] %v999_v32 }
 0x62b   : > { %v623_v35 = vpop.f32.mrf.mxu2 }
 0x62c   : > { %v626_v36 = vadd.f32 %v623_v35, %v605_v34 }
 0x62e   : > { %v628_v38 = vadd.f32 %v627_v37, %v626_v36 }
 0x630   : > { %v629_v39 = vsub.f32 %v628_v38, %v999_v32 }
 0x632   : > { %1006 = vst [vmem:[%s1441_s4 + $0x58] sm:$0xff] %v629_v39  ;;  %vm630_vm10 = vcmp.gt.f32.partialorder %v629_v39, 1.0  ;;  %v661_v45 = vmul.f32 0.5, %v629_v39 }
 0x633   : > { %1008 = vmatmul.msk.f32.vlgmr.msra.gmra.mxu3 %vm630_vm10, %v1268_v22  ;;  %v1004_v40 = vsel %vm630_vm10, 1.0, %v1267_v2 }
 0x634   : > { %1005 = vst [vmem:[%s1552_s23 + $0x58] sm:$0xff] %v1004_v40 }
 0x6b6   : > { %v657_v43 = vpop.f32.mrf.mxu3 }
 0x6b7   : > { %v660_v44 = vadd.f32 %v657_v43, %v639_v42 }
 0x6b9   : > { %v662_v46 = vadd.f32 %v661_v45, %v660_v44 }
 0x6bb   : > { %v663_v47 = vsub.f32 %v662_v46, %v1004_v40 }
 0x6bd   : > { %1011 = vst [vmem:[%s1441_s4 + $0x60] sm:$0xff] %v663_v47  ;;  %vm664_vm11 = vcmp.gt.f32.partialorder %v663_v47, 1.0  ;;  %v695_v53 = vmul.f32 0.5, %v663_v47 }
 0x6be   : > { %1013 = vmatmul.msk.f32.vlgmr.msrb.gmra.mxu0 %vm664_vm11, %v1268_v22  ;;  %v1009_v48 = vsel %vm664_vm11, 1.0, %v1267_v2 }
 0x6bf   : > { %1010 = vst [vmem:[%s1552_s23 + $0x60] sm:$0xff] %v1009_v48 }
 0x73b   : > { %v691_v51 = vpop.f32.mrf.mxu0 }
 0x73c   : > { %v694_v52 = vadd.f32 %v691_v51, %v673_v50 }
 0x73e   : > { %v696_v54 = vadd.f32 %v695_v53, %v694_v52 }
 0x740   : > { %v697_v55 = vsub.f32 %v696_v54, %v1009_v48 }
 0x742   : > { %1016 = vst [vmem:[%s1441_s4 + $0x68] sm:$0xff] %v697_v55  ;;  %vm698_vm12 = vcmp.gt.f32.partialorder %v697_v55, 1.0  ;;  %v729_v61 = vmul.f32 0.5, %v697_v55 }
 0x743   : > { %1018 = vmatmul.msk.f32.vlgmr.msrb.gmra.mxu1 %vm698_vm12, %v1268_v22  ;;  %v1014_v56 = vsel %vm698_vm12, 1.0, %v1267_v2 }
 0x744   : > { %1015 = vst [vmem:[%s1552_s23 + $0x68] sm:$0xff] %v1014_v56 }
 0x7c0   : > { %v725_v59 = vpop.f32.mrf.mxu1 }
 0x7c1   : > { %v728_v60 = vadd.f32 %v725_v59, %v707_v58 }
 0x7c3   : > { %v730_v62 = vadd.f32 %v729_v61, %v728_v60 }
 0x7c5   : > { %v731_v63 = vsub.f32 %v730_v62, %v1014_v56 }
 0x7c7   : > { %1021 = vst [vmem:[%s1441_s4 + $0x70] sm:$0xff] %v731_v63  ;;  %vm732_vm13 = vcmp.gt.f32.partialorder %v731_v63, 1.0  ;;  %v763_v6 = vmul.f32 0.5, %v731_v63 }
 0x7c8   : > { %1023 = vmatmul.msk.f32.vlgmr.msrb.gmra.mxu2 %vm732_vm13, %v1268_v22  ;;  %v1019_v0 = vsel %vm732_vm13, 1.0, %v1267_v2 }
 0x7c9   : > { %1020 = vst [vmem:[%s1552_s23 + $0x70] sm:$0xff] %v1019_v0 }
 0x84b   : > { %v759_v4 = vpop.f32.mrf.mxu2 }
 0x84c   : > { %v762_v5 = vadd.f32 %v759_v4, %v741_v3 }
 0x84e   : > { %v764_v22 = vadd.f32 %v763_v6, %v762_v5 }
 0x850   : > { %v765_v7 = vsub.f32 %v764_v22, %v1019_v0 }
 0x852   : > { %vm766_vm14 = vcmp.gt.f32.partialorder %v765_v7, 1.0  ;;  %1026 = vst [vmem:[%s1441_s4 + $0x78] sm:$0xff] %v765_v7 }
 0x853   : > { %v1024_v8 = vsel %vm766_vm14, 1.0, %v1267_v2 }
 0x854   : > { %1188 = shalt.err (!%p1185_p0)
}
 0x855   : > { %s1269_s19 = smov 128   ;;  %s1270_s20 = smov 8   ;;  %1025 = vst [vmem:[%s1552_s23 + $0x78] sm:$0xff] %v1024_v8 }
 0x856   : > { %1044 = dma.vmem_to_hbm [thread:$0]  (%p1341_p11), %s809_s10, 2048, %s811_s27, %s779_s11, %s1269_s19, %s1269_s19, %s1270_s20  }
 0x857   : > { %s774_s22 = scalar_lea.sflag [#allocation4], %s1413_s26  ;;  %s1203_s29 = sshra.s32 %s1816_s16, 4  ;;  %s1204_s29 = int_to_ptr.hbm [resolvable:$true] %s1203_s29 }
 0x858   : > { %s1205_s5 = scalar_lea.hbm %s1204_s29, 128  ;;  %s1209_s0 = scalar_lea.hbm %s1865_s2, 256 }
 0x859   : > { %p1206_p1 = scmp.ne.s32.totalorder %s1204_s29, %s1205_s5  ;;  %p1210_p5 = scmp.lt.s32.totalorder %s1204_s29, %s1865_s2 }
 0x85a   : > { %p1211_p8 = scmp.lt.s32.totalorder %s1209_s0, %s1205_s5 }
 0x85b   : > { %p1207_p4 = pnand %p1206_p1, %p1341_p11 }
 0x85c   : > { %p1212_p6 = por %p1211_p8, %p1210_p5 }
 0x85d   : > { %p1208_p7 = pneg %p1207_p4 }
 0x85f   : > { %p1213_p13 = pnand %p1212_p6, %p1208_p7 }
 0x861   : > { %1216 = shalt.err (!%p1213_p13)
}
 0x862   : > { %1043 = dma.vmem_to_hbm [thread:$0]  (%p1341_p11), %s1814_s9, 2048, %s1816_s16, %s774_s22, %s1269_s19, %s1269_s19, %s1270_s20  }
 0x863 PF: > { %s825_s26 = sand.u32 1, %s1251_s12   ;;  %p1875_p3 = scmp.ge.s32.totalorder %s1263_s15, 2 }
 0x864   : > { %s826_s23 = scalar_lea.sflag [#allocation4], %s825_s26 }
 0x865   : > { %p1055_p10 = pnand %p1875_p3, %p1345_p12 }
 0x867   : > { %p1056_p2 = pneg %p1055_p10 }
 0x869   : > { %1242 = dma.done.wait (%p1056_p2), %s826_s23, 2048  }
 0x86a   : > { %1244 = vsyncadd (%p1056_p2), %s826_s23, 4294965248  ;;  %s836_s10 = scalar_lea.sflag [#allocation9], %s825_s26 }
 0x86b   : > { %1246 = dma.done.wait (%p1056_p2), %s836_s10, 2048  }
 0x86c   : > { %1248 = vsyncadd (%p1056_p2), %s836_s10, 4294965248  ;;  %p23_p11 = scmp.ge.s32.totalorder %s1316_s18, 4   ;;  %s1876_s12 = smov %s1255_s13 }
 0x86d   : > { %s1877_s13 = smov %s1259_s14  ;;  %s1878_s14 = smov %s1328_s21 }
 0x86e   : > { %s1879_s15 = smov %s1316_s18  ;;  %25 = sbr.rel (!%p23_p11) target bundleno = 11 (0xb), region = 147 }
 0x873   :  { %842 = vsyncpa [#allocation3], 1 }
 0x874   :  { %844 = vsyncpa [#allocation3 + $0x1], 1 }
 0x875   :  { %845 = vsyncpa [#allocation6], 1 }
 0x876   :  { %847 = vsyncpa [#allocation6 + $0x1], 1 }
 0x877   :  { %848 = vsyncpa [#allocation4], 1 }
 0x878   :  { %850 = vsyncpa [#allocation4 + $0x1], 1 }
 0x879   :  { %851 = vsyncpa [#allocation9], 1 }
 0x87a   :  { %853 = vsyncpa [#allocation9 + $0x1], 1 }

</bundles_post_ra>
